<compile_context>
chip_gen: v7x
topology: tpu7x:2x2x1
jax: 0.10.0
libtpu: 0.0.40
codegen_flags: <defaults>
</compile_context>

<pallas_src>
import functools

import numpy as np
import jax
import jax.numpy as jnp
from jax.experimental import pallas as pl
from jax.experimental.pallas import tpu as pltpu


def _gru_embed_kernel(depth, T, B, H, *refs):
    # refs layout (inputs then outputs, no scratch):
    #   [0] lens (B,1) int32, [1] x (T,B,D) f32
    #   layer 0: Wi0 (D,3H) mxu_dtype, Wh0 (H,3H) mxu_dtype,
    #            bi0 (1,3H) f32 [= b_r|b_z|b_in], bhn0 (1,H) f32
    #   layer l>=1: Wf_l (2H,4H) mxu_dtype = [[Wir,Wiz,Win,0],[Whr,Whz,0,Whn]],
    #               bf_l (1,4H) f32 = [b_r|b_z|b_in|b_hn]
    #   fc_w_t (H,O) mxu_dtype, fc_b (1,O) f32
    #   out (B,O) f32, hidden (depth,B,H) f32
    lens_ref, x_ref = refs[0], refs[1]
    wi0_ref, wh0_ref, bi0_ref, bhn0_ref = refs[2], refs[3], refs[4], refs[5]
    idx = 6
    deep_refs = []
    for _ in range(depth - 1):
        deep_refs.append((refs[idx], refs[idx + 1]))
        idx += 2
    fcw_ref, fcb_ref = refs[idx], refs[idx + 1]
    out_ref, hidden_ref = refs[idx + 2], refs[idx + 3]

    lens = lens_ref[...]                       # (B, 1) int32, stays resident
    mxu_dtype = wi0_ref.dtype                  # bf16 fast path / f32 validation path

    # ---- Layer 0: hoisted input projection — one MXU matmul, off the serial path.
    D = x_ref.shape[-1]
    x_all = x_ref[...].reshape(T * B, D).astype(mxu_dtype)
    proj0 = (jnp.dot(x_all, wi0_ref[...], preferred_element_type=jnp.float32)
             + bi0_ref[...]).reshape(T, B, 3 * H)   # kept as a value (no VMEM round-trip)

    # Loop-invariant weights, loaded once.
    Wh0 = wh0_ref[...]                         # (H, 3H)
    bhn0 = bhn0_ref[...]                       # (1, H)
    deep_w = [(w_ref[...], b_ref[...]) for (w_ref, b_ref) in deep_refs]

    h = [jnp.zeros((B, H), jnp.float32) for _ in range(depth)]
    x_in = [None] * depth                      # x_in[l] = h^{l-1}_t from the previous wave

    # ---- Wavefront over time: at wave w, layer l advances to t = w - l.  Every cell
    # in a wave depends only on the previous wave, so the `depth` serial chains
    # interleave in the VLIW scheduler.
    for w in range(T + depth - 1):
        new_h = list(h)
        new_x = list(x_in)
        for l in range(depth):
            t = w - l
            if t < 0 or t >= T:
                continue
            h_prev = h[l]
            if l == 0:
                # single recurrent matmul per step; input part already hoisted
                rec = jnp.dot(h_prev.astype(mxu_dtype), Wh0,
                              preferred_element_type=jnp.float32)
                p = proj0[t]                                   # (B, 3H)
                r = jax.nn.sigmoid(p[:, 0:H] + rec[:, 0:H])
                z = jax.nn.sigmoid(p[:, H:2 * H] + rec[:, H:2 * H])
                n = jnp.tanh(p[:, 2 * H:3 * H] + r * (rec[:, 2 * H:3 * H] + bhn0))
            else:
                # one fused (B,2H) x (2H,4H) matmul: [r | z | n_in | n_rec]
                Wf, bf = deep_w[l - 1]
                xh = jnp.concatenate([x_in[l], h_prev], axis=-1).astype(mxu_dtype)
                g = jnp.dot(xh, Wf, preferred_element_type=jnp.float32) + bf
                r = jax.nn.sigmoid(g[:, 0:H])
                z = jax.nn.sigmoid(g[:, H:2 * H])
                n = jnp.tanh(g[:, 2 * H:3 * H] + r * g[:, 3 * H:4 * H])
            h_new = (1.0 - z) * n + z * h_prev
            # packed-sequence semantics: freeze h once t >= seq_len[i]
            h_step = jnp.where(t < lens, h_new, h_prev)
            new_h[l] = h_step
            if l + 1 < depth:
                new_x[l + 1] = h_step          # feeds layer l+1 in the next wave
        h, x_in = new_h, new_x

    for l in range(depth):
        hidden_ref[l] = h[l]

    # last_out[i] == output[i, seq_len[i]-1, :] == frozen top-layer hidden; fc + LeakyReLU(0.1)
    logits = (jnp.dot(h[depth - 1].astype(mxu_dtype), fcw_ref[...],
                      preferred_element_type=jnp.float32) + fcb_ref[...])
    out_ref[...] = jnp.where(logits >= 0.0, logits, 0.1 * logits)


def _pack_params(params, mxu_dtype):
    """Fuse per-gate GRU weights.

    Layer 0:      Wi (D,3H), Wh (H,3H), bi (1,3H)=[b_r|b_z|b_in], b_hn (1,H).
    Layers >= 1:  Wf (2H,4H) = [[Wir,Wiz,Win,0],[Whr,Whz,0,Whn]],
                  bf (1,4H)  = [b_r|b_z|b_in|b_hn]
                  so one [x,h] matmul yields r/z summed and the n input/recurrent
                  parts separated (r must multiply only the recurrent part).
    """
    flat = []
    for l, (Wir, Wiz, Win, Whr, Whz, Whn, b_r, b_z, b_in, b_hn) in enumerate(params):
        H = Whr.shape[0]
        if l == 0:
            flat += [
                jnp.concatenate([Wir, Wiz, Win], axis=1).astype(mxu_dtype),
                jnp.concatenate([Whr, Whz, Whn], axis=1).astype(mxu_dtype),
                jnp.concatenate([b_r, b_z, b_in], axis=1).astype(jnp.float32),
                b_hn.astype(jnp.float32),
            ]
        else:
            zi = jnp.zeros((Wir.shape[0], H), jnp.float32)
            zh = jnp.zeros((H, H), jnp.float32)
            top = jnp.concatenate([Wir, Wiz, Win, zi], axis=1)   # x rows
            bot = jnp.concatenate([Whr, Whz, zh, Whn], axis=1)   # h rows
            flat += [
                jnp.concatenate([top, bot], axis=0).astype(mxu_dtype),
                jnp.concatenate([b_r, b_z, b_in, b_hn], axis=1).astype(jnp.float32),
            ]
    return flat


def time_series_embedding(in_sequences, seq_lengths, params, fc_w_t, fc_b,
                          hidden_dim, rnn_depth, output_dim,
                          mxu_dtype=jnp.bfloat16):
    """in_sequences: (B, T, input_dim) float32 (batch_first, like PyTorch)."""
    B, T, _ = in_sequences.shape
    # TODO(synk): fold this transpose into the input BlockSpec/index_map once a batch
    #             grid axis exists (removes a standalone HBM round-trip at scale).
    x_tbd = jnp.transpose(in_sequences, (1, 0, 2)).astype(jnp.float32)  # time-major
    lens = seq_lengths.astype(jnp.int32).reshape(B, 1)

    flat_params = _pack_params(params, mxu_dtype)
    fcw = fc_w_t.astype(mxu_dtype)
    fcb = fc_b.astype(jnp.float32)
    n_in = 2 + len(flat_params) + 2

    kernel = functools.partial(_gru_embed_kernel, rnn_depth, T, B, hidden_dim)
    out, hidden = pl.pallas_call(
        kernel,
        out_shape=(jax.ShapeDtypeStruct((B, output_dim), jnp.float32),
                   jax.ShapeDtypeStruct((rnn_depth, B, hidden_dim), jnp.float32)),
        in_specs=[pl.BlockSpec(memory_space=pltpu.MemorySpace.VMEM)] * n_in,
        out_specs=(pl.BlockSpec(memory_space=pltpu.MemorySpace.VMEM),
                   pl.BlockSpec(memory_space=pltpu.MemorySpace.VMEM)),
    )(lens, x_tbd, *flat_params, fcw, fcb)
    return out, hidden


def init_params(key, input_dim, hidden_dim, rnn_depth, output_dim):
    # Deterministic synthetic init (uniform, PyTorch's default scale).
    # TODO(synk): orthogonal_ init of the W_hh blocks (init-only in the module) is not
    #             reproduced; it does not change forward-pass semantics.
    k = 1.0 / np.sqrt(hidden_dim)
    keys = jax.random.split(key, rnn_depth * 10 + 2)
    ki = 0
    params = []
    for l in range(rnn_depth):
        d_in = input_dim if l == 0 else hidden_dim

        def u(shape):
            nonlocal ki
            w = jax.random.uniform(keys[ki], shape, jnp.float32, -k, k)
            ki += 1
            return w

        Wir = u((d_in, hidden_dim))
        Wiz = u((d_in, hidden_dim))
        Win = u((d_in, hidden_dim))
        Whr = u((hidden_dim, hidden_dim))
        Whz = u((hidden_dim, hidden_dim))
        Whn = u((hidden_dim, hidden_dim))
        # b_r / b_z combine PyTorch's (b_ir + b_hr) / (b_iz + b_hz); b_in and b_hn stay
        # separate because b_hn sits inside the r-gate product.
        b_r = u((1, hidden_dim))
        b_z = u((1, hidden_dim))
        b_in = u((1, hidden_dim))
        b_hn = u((1, hidden_dim))
        params.append((Wir, Wiz, Win, Whr, Whz, Whn, b_r, b_z, b_in, b_hn))
    fc_w_t = jax.random.uniform(keys[ki], (hidden_dim, output_dim), jnp.float32, -k, k)
    ki += 1
    fc_b = jax.random.uniform(keys[ki], (1, output_dim), jnp.float32, -k, k)
    return params, fc_w_t, fc_b


def reference(in_sequences, seq_lengths, params, fc_w_t, fc_b, hidden_dim, rnn_depth):
    """Pure-JAX f32 reference of the same forward semantics (masked GRU, unfused weights)."""
    B, T, _ = in_sequences.shape
    lens = seq_lengths.astype(jnp.int32)[:, None]
    inp = in_sequences.astype(jnp.float32)
    hiddens = []
    for l in range(rnn_depth):
        Wir, Wiz, Win, Whr, Whz, Whn, b_r, b_z, b_in, b_hn = params[l]
        h = jnp.zeros((B, hidden_dim), jnp.float32)
        outs = []
        for t in range(T):
            x_t = inp[:, t, :]
            r = jax.nn.sigmoid(x_t @ Wir + h @ Whr + b_r)
            z = jax.nn.sigmoid(x_t @ Wiz + h @ Whz + b_z)
            n = jnp.tanh(x_t @ Win + b_in + r * (h @ Whn + b_hn))
            h_new = (1.0 - z) * n + z * h
            h = jnp.where(t < lens, h_new, h)
            outs.append(h)
        inp = jnp.stack(outs, axis=1)
        hiddens.append(h)
    logits = hiddens[-1] @ fc_w_t + fc_b
    out = jnp.where(logits >= 0.0, logits, 0.1 * logits)
    return out, jnp.stack(hiddens, axis=0)


if __name__ == "__main__":
    B, T, input_dim, hidden_dim, rnn_depth, output_dim = 8, 8, 16, 32, 2, 16

    key = jax.random.PRNGKey(0)
    k_x, k_p = jax.random.split(key)
    in_sequences = jax.random.normal(k_x, (B, T, input_dim), jnp.float32)
    # pack_padded_sequence(enforce_sorted=True) expects descending, nonzero lengths
    seq_lengths = jnp.array([8, 7, 6, 5, 4, 3, 2, 2], jnp.int32)
    features = None  # unused by the PyTorch forward

    params, fc_w_t, fc_b = init_params(k_p, input_dim, hidden_dim, rnn_depth, output_dim)
    ref_out, ref_hidden = reference(in_sequences, seq_lengths, params, fc_w_t, fc_b,
                                    hidden_dim, rnn_depth)

    # f32 MXU path: tight structural/semantic check.
    out32, hid32 = time_series_embedding(in_sequences, seq_lengths, params, fc_w_t, fc_b,
                                         hidden_dim, rnn_depth, output_dim,
                                         mxu_dtype=jnp.float32)
    jax.block_until_ready((out32, hid32))
    assert np.allclose(np.asarray(out32), np.asarray(ref_out), atol=1e-4, rtol=1e-4)
    assert np.allclose(np.asarray(hid32), np.asarray(ref_hidden), atol=1e-4, rtol=1e-4)

    # bf16 MXU path (default fast path on v5e/v6e/v7x); tolerance loosened per review.
    out, hidden = time_series_embedding(in_sequences, seq_lengths, params, fc_w_t, fc_b,
                                        hidden_dim, rnn_depth, output_dim,
                                        mxu_dtype=jnp.bfloat16)
    jax.block_until_ready((out, hidden))
    assert np.allclose(np.asarray(out), np.asarray(ref_out), atol=5e-2, rtol=5e-2)
    assert np.allclose(np.asarray(hidden), np.asarray(ref_hidden), atol=5e-2, rtol=5e-2)

    print("KERNEL_OK")
</pallas_src>

<mosaic_0001>
module attributes {stable_mosaic.version = 11 : i64} {
  func.func @_gru_embed_kernel(%arg0: memref<8x1xi32, #tpu.memory_space<vmem>>, %arg1: memref<8x8x16xf32, #tpu.memory_space<vmem>>, %arg2: memref<16x96xf32, #tpu.memory_space<vmem>>, %arg3: memref<32x96xf32, #tpu.memory_space<vmem>>, %arg4: memref<1x96xf32, #tpu.memory_space<vmem>>, %arg5: memref<1x32xf32, #tpu.memory_space<vmem>>, %arg6: memref<64x128xf32, #tpu.memory_space<vmem>>, %arg7: memref<1x128xf32, #tpu.memory_space<vmem>>, %arg8: memref<32x16xf32, #tpu.memory_space<vmem>>, %arg9: memref<1x16xf32, #tpu.memory_space<vmem>>, %arg10: memref<8x16xf32, #tpu.memory_space<vmem>>, %arg11: memref<2x8x32xf32, #tpu.memory_space<vmem>>) attributes {dimension_semantics = [], scalar_prefetch = 0 : i64, scratch_operands = 0 : i64, tpu.core_type = #tpu.core_type<tc>} {
    %c0 = arith.constant 0 : index
    %c0_0 = arith.constant 0 : index
    %0 = vector.load %arg0[%c0, %c0_0] : memref<8x1xi32, #tpu.memory_space<vmem>>, vector<8x1xi32>
    %c0_1 = arith.constant 0 : index
    %c0_2 = arith.constant 0 : index
    %c0_3 = arith.constant 0 : index
    %1 = vector.load %arg1[%c0_1, %c0_2, %c0_3] : memref<8x8x16xf32, #tpu.memory_space<vmem>>, vector<8x8x16xf32>
    %2 = vector.shape_cast %1 : vector<8x8x16xf32> to vector<64x16xf32>
    %c0_4 = arith.constant 0 : index
    %c0_5 = arith.constant 0 : index
    %3 = vector.load %arg2[%c0_4, %c0_5] : memref<16x96xf32, #tpu.memory_space<vmem>>, vector<16x96xf32>
    %cst = arith.constant dense<0.000000e+00> : vector<64x96xf32>
    %4 = tpu.matmul %2, %3, %cst {dimension_numbers = #tpu.dot_dimension_numbers<[1], [0], [0], [1], [0, 0, 1, 1], [], []>} : vector<64x16xf32>, vector<16x96xf32>, vector<64x96xf32> -> vector<64x96xf32>
    %c0_6 = arith.constant 0 : index
    %c0_7 = arith.constant 0 : index
    %5 = vector.load %arg4[%c0_6, %c0_7] : memref<1x96xf32, #tpu.memory_space<vmem>>, vector<1x96xf32>
    %6 = vector.broadcast %5 : vector<1x96xf32> to vector<64x96xf32>
    %7 = arith.addf %4, %6 : vector<64x96xf32>
    %8 = vector.shape_cast %7 : vector<64x96xf32> to vector<8x8x96xf32>
    %c0_8 = arith.constant 0 : index
    %c0_9 = arith.constant 0 : index
    %9 = vector.load %arg3[%c0_8, %c0_9] : memref<32x96xf32, #tpu.memory_space<vmem>>, vector<32x96xf32>
    %c0_10 = arith.constant 0 : index
    %c0_11 = arith.constant 0 : index
    %10 = vector.load %arg5[%c0_10, %c0_11] : memref<1x32xf32, #tpu.memory_space<vmem>>, vector<1x32xf32>
    %c0_12 = arith.constant 0 : index
    %c0_13 = arith.constant 0 : index
    %11 = vector.load %arg6[%c0_12, %c0_13] : memref<64x128xf32, #tpu.memory_space<vmem>>, vector<64x128xf32>
    %c0_14 = arith.constant 0 : index
    %c0_15 = arith.constant 0 : index
    %12 = vector.load %arg7[%c0_14, %c0_15] : memref<1x128xf32, #tpu.memory_space<vmem>>, vector<1x128xf32>
    %cst_16 = arith.constant 0.000000e+00 : f32
    %13 = vector.broadcast %cst_16 : f32 to vector<8x32xf32>
    %cst_17 = arith.constant 0.000000e+00 : f32
    %14 = vector.broadcast %cst_17 : f32 to vector<8x32xf32>
    %cst_18 = arith.constant dense<0.000000e+00> : vector<8x96xf32>
    %15 = tpu.matmul %13, %9, %cst_18 {dimension_numbers = #tpu.dot_dimension_numbers<[1], [0], [0], [1], [0, 0, 1, 1], [], []>} : vector<8x32xf32>, vector<32x96xf32>, vector<8x96xf32> -> vector<8x96xf32>
    %16 = vector.extract_strided_slice %8 {offsets = [0, 0, 0], sizes = [1, 8, 96], strides = [1, 1, 1]} : vector<8x8x96xf32> to vector<1x8x96xf32>
    %17 = vector.shape_cast %16 : vector<1x8x96xf32> to vector<8x96xf32>
    %18 = vector.extract_strided_slice %17 {offsets = [0, 0], sizes = [8, 32], strides = [1, 1]} : vector<8x96xf32> to vector<8x32xf32>
    %19 = vector.extract_strided_slice %15 {offsets = [0, 0], sizes = [8, 32], strides = [1, 1]} : vector<8x96xf32> to vector<8x32xf32>
    %20 = arith.addf %18, %19 : vector<8x32xf32>
    %21 = arith.negf %20 : vector<8x32xf32>
    %22 = math.exp %21 : vector<8x32xf32>
    %cst_19 = arith.constant 1.000000e+00 : f32
    %23 = vector.broadcast %cst_19 : f32 to vector<8x32xf32>
    %24 = arith.addf %23, %22 : vector<8x32xf32>
    %25 = arith.divf %23, %24 : vector<8x32xf32>
    %26 = vector.extract_strided_slice %17 {offsets = [0, 32], sizes = [8, 32], strides = [1, 1]} : vector<8x96xf32> to vector<8x32xf32>
    %27 = vector.extract_strided_slice %15 {offsets = [0, 32], sizes = [8, 32], strides = [1, 1]} : vector<8x96xf32> to vector<8x32xf32>
    %28 = arith.addf %26, %27 : vector<8x32xf32>
    %29 = arith.negf %28 : vector<8x32xf32>
    %30 = math.exp %29 : vector<8x32xf32>
    %cst_20 = arith.constant 1.000000e+00 : f32
    %31 = vector.broadcast %cst_20 : f32 to vector<8x32xf32>
    %32 = arith.addf %31, %30 : vector<8x32xf32>
    %33 = arith.divf %31, %32 : vector<8x32xf32>
    %34 = vector.extract_strided_slice %17 {offsets = [0, 64], sizes = [8, 32], strides = [1, 1]} : vector<8x96xf32> to vector<8x32xf32>
    %35 = vector.extract_strided_slice %15 {offsets = [0, 64], sizes = [8, 32], strides = [1, 1]} : vector<8x96xf32> to vector<8x32xf32>
    %36 = vector.broadcast %10 : vector<1x32xf32> to vector<8x32xf32>
    %37 = arith.addf %35, %36 : vector<8x32xf32>
    %38 = arith.mulf %25, %37 : vector<8x32xf32>
    %39 = arith.addf %34, %38 : vector<8x32xf32>
    %40 = math.tanh %39 : vector<8x32xf32>
    %cst_21 = arith.constant 1.000000e+00 : f32
    %41 = vector.broadcast %cst_21 : f32 to vector<8x32xf32>
    %42 = arith.subf %41, %33 : vector<8x32xf32>
    %43 = arith.mulf %42, %40 : vector<8x32xf32>
    %44 = arith.mulf %33, %13 : vector<8x32xf32>
    %45 = arith.addf %43, %44 : vector<8x32xf32>
    %c0_i32 = arith.constant 0 : i32
    %46 = vector.broadcast %c0_i32 : i32 to vector<8x1xi32>
    %47 = arith.cmpi sgt, %0, %46 : vector<8x1xi32>
    %48 = vector.shape_cast %47 : vector<8x1xi1> to vector<8x1xi1>
    %49 = vector.broadcast %48 : vector<8x1xi1> to vector<8x32xi1>
    %50 = arith.select %49, %45, %13 : vector<8x32xi1>, vector<8x32xf32>
    %cst_22 = arith.constant dense<0.000000e+00> : vector<8x96xf32>
    %51 = tpu.matmul %50, %9, %cst_22 {dimension_numbers = #tpu.dot_dimension_numbers<[1], [0], [0], [1], [0, 0, 1, 1], [], []>} : vector<8x32xf32>, vector<32x96xf32>, vector<8x96xf32> -> vector<8x96xf32>
    %52 = vector.extract_strided_slice %8 {offsets = [1, 0, 0], sizes = [1, 8, 96], strides = [1, 1, 1]} : vector<8x8x96xf32> to vector<1x8x96xf32>
    %53 = vector.shape_cast %52 : vector<1x8x96xf32> to vector<8x96xf32>
    %54 = vector.extract_strided_slice %53 {offsets = [0, 0], sizes = [8, 32], strides = [1, 1]} : vector<8x96xf32> to vector<8x32xf32>
    %55 = vector.extract_strided_slice %51 {offsets = [0, 0], sizes = [8, 32], strides = [1, 1]} : vector<8x96xf32> to vector<8x32xf32>
    %56 = arith.addf %54, %55 : vector<8x32xf32>
    %57 = arith.negf %56 : vector<8x32xf32>
    %58 = math.exp %57 : vector<8x32xf32>
    %cst_23 = arith.constant 1.000000e+00 : f32
    %59 = vector.broadcast %cst_23 : f32 to vector<8x32xf32>
    %60 = arith.addf %59, %58 : vector<8x32xf32>
    %61 = arith.divf %59, %60 : vector<8x32xf32>
    %62 = vector.extract_strided_slice %53 {offsets = [0, 32], sizes = [8, 32], strides = [1, 1]} : vector<8x96xf32> to vector<8x32xf32>
    %63 = vector.extract_strided_slice %51 {offsets = [0, 32], sizes = [8, 32], strides = [1, 1]} : vector<8x96xf32> to vector<8x32xf32>
    %64 = arith.addf %62, %63 : vector<8x32xf32>
    %65 = arith.negf %64 : vector<8x32xf32>
    %66 = math.exp %65 : vector<8x32xf32>
    %cst_24 = arith.constant 1.000000e+00 : f32
    %67 = vector.broadcast %cst_24 : f32 to vector<8x32xf32>
    %68 = arith.addf %67, %66 : vector<8x32xf32>
    %69 = arith.divf %67, %68 : vector<8x32xf32>
    %70 = vector.extract_strided_slice %53 {offsets = [0, 64], sizes = [8, 32], strides = [1, 1]} : vector<8x96xf32> to vector<8x32xf32>
    %71 = vector.extract_strided_slice %51 {offsets = [0, 64], sizes = [8, 32], strides = [1, 1]} : vector<8x96xf32> to vector<8x32xf32>
    %72 = vector.broadcast %10 : vector<1x32xf32> to vector<8x32xf32>
    %73 = arith.addf %71, %72 : vector<8x32xf32>
    %74 = arith.mulf %61, %73 : vector<8x32xf32>
    %75 = arith.addf %70, %74 : vector<8x32xf32>
    %76 = math.tanh %75 : vector<8x32xf32>
    %cst_25 = arith.constant 1.000000e+00 : f32
    %77 = vector.broadcast %cst_25 : f32 to vector<8x32xf32>
    %78 = arith.subf %77, %69 : vector<8x32xf32>
    %79 = arith.mulf %78, %76 : vector<8x32xf32>
    %80 = arith.mulf %69, %50 : vector<8x32xf32>
    %81 = arith.addf %79, %80 : vector<8x32xf32>
    %c1_i32 = arith.constant 1 : i32
    %82 = vector.broadcast %c1_i32 : i32 to vector<8x1xi32>
    %83 = arith.cmpi sgt, %0, %82 : vector<8x1xi32>
    %84 = vector.shape_cast %83 : vector<8x1xi1> to vector<8x1xi1>
    %85 = vector.broadcast %84 : vector<8x1xi1> to vector<8x32xi1>
    %86 = arith.select %85, %81, %50 : vector<8x32xi1>, vector<8x32xf32>
    %87 = tpu.concatenate %50, %14 in 1 : vector<8x32xf32>, vector<8x32xf32> -> vector<8x64xf32>
    %cst_26 = arith.constant dense<0.000000e+00> : vector<8x128xf32>
    %88 = tpu.matmul %87, %11, %cst_26 {dimension_numbers = #tpu.dot_dimension_numbers<[1], [0], [0], [1], [0, 0, 1, 1], [], []>} : vector<8x64xf32>, vector<64x128xf32>, vector<8x128xf32> -> vector<8x128xf32>
    %89 = vector.broadcast %12 : vector<1x128xf32> to vector<8x128xf32>
    %90 = arith.addf %88, %89 : vector<8x128xf32>
    %91 = vector.extract_strided_slice %90 {offsets = [0, 0], sizes = [8, 32], strides = [1, 1]} : vector<8x128xf32> to vector<8x32xf32>
    %92 = arith.negf %91 : vector<8x32xf32>
    %93 = math.exp %92 : vector<8x32xf32>
    %cst_27 = arith.constant 1.000000e+00 : f32
    %94 = vector.broadcast %cst_27 : f32 to vector<8x32xf32>
    %95 = arith.addf %94, %93 : vector<8x32xf32>
    %96 = arith.divf %94, %95 : vector<8x32xf32>
    %97 = vector.extract_strided_slice %90 {offsets = [0, 32], sizes = [8, 32], strides = [1, 1]} : vector<8x128xf32> to vector<8x32xf32>
    %98 = arith.negf %97 : vector<8x32xf32>
    %99 = math.exp %98 : vector<8x32xf32>
    %cst_28 = arith.constant 1.000000e+00 : f32
    %100 = vector.broadcast %cst_28 : f32 to vector<8x32xf32>
    %101 = arith.addf %100, %99 : vector<8x32xf32>
    %102 = arith.divf %100, %101 : vector<8x32xf32>
    %103 = vector.extract_strided_slice %90 {offsets = [0, 64], sizes = [8, 32], strides = [1, 1]} : vector<8x128xf32> to vector<8x32xf32>
    %104 = vector.extract_strided_slice %90 {offsets = [0, 96], sizes = [8, 32], strides = [1, 1]} : vector<8x128xf32> to vector<8x32xf32>
    %105 = arith.mulf %96, %104 : vector<8x32xf32>
    %106 = arith.addf %103, %105 : vector<8x32xf32>
    %107 = math.tanh %106 : vector<8x32xf32>
    %cst_29 = arith.constant 1.000000e+00 : f32
    %108 = vector.broadcast %cst_29 : f32 to vector<8x32xf32>
    %109 = arith.subf %108, %102 : vector<8x32xf32>
    %110 = arith.mulf %109, %107 : vector<8x32xf32>
    %111 = arith.mulf %102, %14 : vector<8x32xf32>
    %112 = arith.addf %110, %111 : vector<8x32xf32>
    %c0_i32_30 = arith.constant 0 : i32
    %113 = vector.broadcast %c0_i32_30 : i32 to vector<8x1xi32>
    %114 = arith.cmpi sgt, %0, %113 : vector<8x1xi32>
    %115 = vector.shape_cast %114 : vector<8x1xi1> to vector<8x1xi1>
    %116 = vector.broadcast %115 : vector<8x1xi1> to vector<8x32xi1>
    %117 = arith.select %116, %112, %14 : vector<8x32xi1>, vector<8x32xf32>
    %cst_31 = arith.constant dense<0.000000e+00> : vector<8x96xf32>
    %118 = tpu.matmul %86, %9, %cst_31 {dimension_numbers = #tpu.dot_dimension_numbers<[1], [0], [0], [1], [0, 0, 1, 1], [], []>} : vector<8x32xf32>, vector<32x96xf32>, vector<8x96xf32> -> vector<8x96xf32>
    %119 = vector.extract_strided_slice %8 {offsets = [2, 0, 0], sizes = [1, 8, 96], strides = [1, 1, 1]} : vector<8x8x96xf32> to vector<1x8x96xf32>
    %120 = vector.shape_cast %119 : vector<1x8x96xf32> to vector<8x96xf32>
    %121 = vector.extract_strided_slice %120 {offsets = [0, 0], sizes = [8, 32], strides = [1, 1]} : vector<8x96xf32> to vector<8x32xf32>
    %122 = vector.extract_strided_slice %118 {offsets = [0, 0], sizes = [8, 32], strides = [1, 1]} : vector<8x96xf32> to vector<8x32xf32>
    %123 = arith.addf %121, %122 : vector<8x32xf32>
    %124 = arith.negf %123 : vector<8x32xf32>
    %125 = math.exp %124 : vector<8x32xf32>
    %cst_32 = arith.constant 1.000000e+00 : f32
    %126 = vector.broadcast %cst_32 : f32 to vector<8x32xf32>
    %127 = arith.addf %126, %125 : vector<8x32xf32>
    %128 = arith.divf %126, %127 : vector<8x32xf32>
    %129 = vector.extract_strided_slice %120 {offsets = [0, 32], sizes = [8, 32], strides = [1, 1]} : vector<8x96xf32> to vector<8x32xf32>
    %130 = vector.extract_strided_slice %118 {offsets = [0, 32], sizes = [8, 32], strides = [1, 1]} : vector<8x96xf32> to vector<8x32xf32>
    %131 = arith.addf %129, %130 : vector<8x32xf32>
    %132 = arith.negf %131 : vector<8x32xf32>
    %133 = math.exp %132 : vector<8x32xf32>
    %cst_33 = arith.constant 1.000000e+00 : f32
    %134 = vector.broadcast %cst_33 : f32 to vector<8x32xf32>
    %135 = arith.addf %134, %133 : vector<8x32xf32>
    %136 = arith.divf %134, %135 : vector<8x32xf32>
    %137 = vector.extract_strided_slice %120 {offsets = [0, 64], sizes = [8, 32], strides = [1, 1]} : vector<8x96xf32> to vector<8x32xf32>
    %138 = vector.extract_strided_slice %118 {offsets = [0, 64], sizes = [8, 32], strides = [1, 1]} : vector<8x96xf32> to vector<8x32xf32>
    %139 = vector.broadcast %10 : vector<1x32xf32> to vector<8x32xf32>
    %140 = arith.addf %138, %139 : vector<8x32xf32>
    %141 = arith.mulf %128, %140 : vector<8x32xf32>
    %142 = arith.addf %137, %141 : vector<8x32xf32>
    %143 = math.tanh %142 : vector<8x32xf32>
    %cst_34 = arith.constant 1.000000e+00 : f32
    %144 = vector.broadcast %cst_34 : f32 to vector<8x32xf32>
    %145 = arith.subf %144, %136 : vector<8x32xf32>
    %146 = arith.mulf %145, %143 : vector<8x32xf32>
    %147 = arith.mulf %136, %86 : vector<8x32xf32>
    %148 = arith.addf %146, %147 : vector<8x32xf32>
    %c2_i32 = arith.constant 2 : i32
    %149 = vector.broadcast %c2_i32 : i32 to vector<8x1xi32>
    %150 = arith.cmpi sgt, %0, %149 : vector<8x1xi32>
    %151 = vector.shape_cast %150 : vector<8x1xi1> to vector<8x1xi1>
    %152 = vector.broadcast %151 : vector<8x1xi1> to vector<8x32xi1>
    %153 = arith.select %152, %148, %86 : vector<8x32xi1>, vector<8x32xf32>
    %154 = tpu.concatenate %86, %117 in 1 : vector<8x32xf32>, vector<8x32xf32> -> vector<8x64xf32>
    %cst_35 = arith.constant dense<0.000000e+00> : vector<8x128xf32>
    %155 = tpu.matmul %154, %11, %cst_35 {dimension_numbers = #tpu.dot_dimension_numbers<[1], [0], [0], [1], [0, 0, 1, 1], [], []>} : vector<8x64xf32>, vector<64x128xf32>, vector<8x128xf32> -> vector<8x128xf32>
    %156 = vector.broadcast %12 : vector<1x128xf32> to vector<8x128xf32>
    %157 = arith.addf %155, %156 : vector<8x128xf32>
    %158 = vector.extract_strided_slice %157 {offsets = [0, 0], sizes = [8, 32], strides = [1, 1]} : vector<8x128xf32> to vector<8x32xf32>
    %159 = arith.negf %158 : vector<8x32xf32>
    %160 = math.exp %159 : vector<8x32xf32>
    %cst_36 = arith.constant 1.000000e+00 : f32
    %161 = vector.broadcast %cst_36 : f32 to vector<8x32xf32>
    %162 = arith.addf %161, %160 : vector<8x32xf32>
    %163 = arith.divf %161, %162 : vector<8x32xf32>
    %164 = vector.extract_strided_slice %157 {offsets = [0, 32], sizes = [8, 32], strides = [1, 1]} : vector<8x128xf32> to vector<8x32xf32>
    %165 = arith.negf %164 : vector<8x32xf32>
    %166 = math.exp %165 : vector<8x32xf32>
    %cst_37 = arith.constant 1.000000e+00 : f32
    %167 = vector.broadcast %cst_37 : f32 to vector<8x32xf32>
    %168 = arith.addf %167, %166 : vector<8x32xf32>
    %169 = arith.divf %167, %168 : vector<8x32xf32>
    %170 = vector.extract_strided_slice %157 {offsets = [0, 64], sizes = [8, 32], strides = [1, 1]} : vector<8x128xf32> to vector<8x32xf32>
    %171 = vector.extract_strided_slice %157 {offsets = [0, 96], sizes = [8, 32], strides = [1, 1]} : vector<8x128xf32> to vector<8x32xf32>
    %172 = arith.mulf %163, %171 : vector<8x32xf32>
    %173 = arith.addf %170, %172 : vector<8x32xf32>
    %174 = math.tanh %173 : vector<8x32xf32>
    %cst_38 = arith.constant 1.000000e+00 : f32
    %175 = vector.broadcast %cst_38 : f32 to vector<8x32xf32>
    %176 = arith.subf %175, %169 : vector<8x32xf32>
    %177 = arith.mulf %176, %174 : vector<8x32xf32>
    %178 = arith.mulf %169, %117 : vector<8x32xf32>
    %179 = arith.addf %177, %178 : vector<8x32xf32>
    %c1_i32_39 = arith.constant 1 : i32
    %180 = vector.broadcast %c1_i32_39 : i32 to vector<8x1xi32>
    %181 = arith.cmpi sgt, %0, %180 : vector<8x1xi32>
    %182 = vector.shape_cast %181 : vector<8x1xi1> to vector<8x1xi1>
    %183 = vector.broadcast %182 : vector<8x1xi1> to vector<8x32xi1>
    %184 = arith.select %183, %179, %117 : vector<8x32xi1>, vector<8x32xf32>
    %cst_40 = arith.constant dense<0.000000e+00> : vector<8x96xf32>
    %185 = tpu.matmul %153, %9, %cst_40 {dimension_numbers = #tpu.dot_dimension_numbers<[1], [0], [0], [1], [0, 0, 1, 1], [], []>} : vector<8x32xf32>, vector<32x96xf32>, vector<8x96xf32> -> vector<8x96xf32>
    %186 = vector.extract_strided_slice %8 {offsets = [3, 0, 0], sizes = [1, 8, 96], strides = [1, 1, 1]} : vector<8x8x96xf32> to vector<1x8x96xf32>
    %187 = vector.shape_cast %186 : vector<1x8x96xf32> to vector<8x96xf32>
    %188 = vector.extract_strided_slice %187 {offsets = [0, 0], sizes = [8, 32], strides = [1, 1]} : vector<8x96xf32> to vector<8x32xf32>
    %189 = vector.extract_strided_slice %185 {offsets = [0, 0], sizes = [8, 32], strides = [1, 1]} : vector<8x96xf32> to vector<8x32xf32>
    %190 = arith.addf %188, %189 : vector<8x32xf32>
    %191 = arith.negf %190 : vector<8x32xf32>
    %192 = math.exp %191 : vector<8x32xf32>
    %cst_41 = arith.constant 1.000000e+00 : f32
    %193 = vector.broadcast %cst_41 : f32 to vector<8x32xf32>
    %194 = arith.addf %193, %192 : vector<8x32xf32>
    %195 = arith.divf %193, %194 : vector<8x32xf32>
    %196 = vector.extract_strided_slice %187 {offsets = [0, 32], sizes = [8, 32], strides = [1, 1]} : vector<8x96xf32> to vector<8x32xf32>
    %197 = vector.extract_strided_slice %185 {offsets = [0, 32], sizes = [8, 32], strides = [1, 1]} : vector<8x96xf32> to vector<8x32xf32>
    %198 = arith.addf %196, %197 : vector<8x32xf32>
    %199 = arith.negf %198 : vector<8x32xf32>
    %200 = math.exp %199 : vector<8x32xf32>
    %cst_42 = arith.constant 1.000000e+00 : f32
    %201 = vector.broadcast %cst_42 : f32 to vector<8x32xf32>
    %202 = arith.addf %201, %200 : vector<8x32xf32>
    %203 = arith.divf %201, %202 : vector<8x32xf32>
    %204 = vector.extract_strided_slice %187 {offsets = [0, 64], sizes = [8, 32], strides = [1, 1]} : vector<8x96xf32> to vector<8x32xf32>
    %205 = vector.extract_strided_slice %185 {offsets = [0, 64], sizes = [8, 32], strides = [1, 1]} : vector<8x96xf32> to vector<8x32xf32>
    %206 = vector.broadcast %10 : vector<1x32xf32> to vector<8x32xf32>
    %207 = arith.addf %205, %206 : vector<8x32xf32>
    %208 = arith.mulf %195, %207 : vector<8x32xf32>
    %209 = arith.addf %204, %208 : vector<8x32xf32>
    %210 = math.tanh %209 : vector<8x32xf32>
    %cst_43 = arith.constant 1.000000e+00 : f32
    %211 = vector.broadcast %cst_43 : f32 to vector<8x32xf32>
    %212 = arith.subf %211, %203 : vector<8x32xf32>
    %213 = arith.mulf %212, %210 : vector<8x32xf32>
    %214 = arith.mulf %203, %153 : vector<8x32xf32>
    %215 = arith.addf %213, %214 : vector<8x32xf32>
    %c3_i32 = arith.constant 3 : i32
    %216 = vector.broadcast %c3_i32 : i32 to vector<8x1xi32>
    %217 = arith.cmpi sgt, %0, %216 : vector<8x1xi32>
    %218 = vector.shape_cast %217 : vector<8x1xi1> to vector<8x1xi1>
    %219 = vector.broadcast %218 : vector<8x1xi1> to vector<8x32xi1>
    %220 = arith.select %219, %215, %153 : vector<8x32xi1>, vector<8x32xf32>
    %221 = tpu.concatenate %153, %184 in 1 : vector<8x32xf32>, vector<8x32xf32> -> vector<8x64xf32>
    %cst_44 = arith.constant dense<0.000000e+00> : vector<8x128xf32>
    %222 = tpu.matmul %221, %11, %cst_44 {dimension_numbers = #tpu.dot_dimension_numbers<[1], [0], [0], [1], [0, 0, 1, 1], [], []>} : vector<8x64xf32>, vector<64x128xf32>, vector<8x128xf32> -> vector<8x128xf32>
    %223 = vector.broadcast %12 : vector<1x128xf32> to vector<8x128xf32>
    %224 = arith.addf %222, %223 : vector<8x128xf32>
    %225 = vector.extract_strided_slice %224 {offsets = [0, 0], sizes = [8, 32], strides = [1, 1]} : vector<8x128xf32> to vector<8x32xf32>
    %226 = arith.negf %225 : vector<8x32xf32>
    %227 = math.exp %226 : vector<8x32xf32>
    %cst_45 = arith.constant 1.000000e+00 : f32
    %228 = vector.broadcast %cst_45 : f32 to vector<8x32xf32>
    %229 = arith.addf %228, %227 : vector<8x32xf32>
    %230 = arith.divf %228, %229 : vector<8x32xf32>
    %231 = vector.extract_strided_slice %224 {offsets = [0, 32], sizes = [8, 32], strides = [1, 1]} : vector<8x128xf32> to vector<8x32xf32>
    %232 = arith.negf %231 : vector<8x32xf32>
    %233 = math.exp %232 : vector<8x32xf32>
    %cst_46 = arith.constant 1.000000e+00 : f32
    %234 = vector.broadcast %cst_46 : f32 to vector<8x32xf32>
    %235 = arith.addf %234, %233 : vector<8x32xf32>
    %236 = arith.divf %234, %235 : vector<8x32xf32>
    %237 = vector.extract_strided_slice %224 {offsets = [0, 64], sizes = [8, 32], strides = [1, 1]} : vector<8x128xf32> to vector<8x32xf32>
    %238 = vector.extract_strided_slice %224 {offsets = [0, 96], sizes = [8, 32], strides = [1, 1]} : vector<8x128xf32> to vector<8x32xf32>
    %239 = arith.mulf %230, %238 : vector<8x32xf32>
    %240 = arith.addf %237, %239 : vector<8x32xf32>
    %241 = math.tanh %240 : vector<8x32xf32>
    %cst_47 = arith.constant 1.000000e+00 : f32
    %242 = vector.broadcast %cst_47 : f32 to vector<8x32xf32>
    %243 = arith.subf %242, %236 : vector<8x32xf32>
    %244 = arith.mulf %243, %241 : vector<8x32xf32>
    %245 = arith.mulf %236, %184 : vector<8x32xf32>
    %246 = arith.addf %244, %245 : vector<8x32xf32>
    %c2_i32_48 = arith.constant 2 : i32
    %247 = vector.broadcast %c2_i32_48 : i32 to vector<8x1xi32>
    %248 = arith.cmpi sgt, %0, %247 : vector<8x1xi32>
    %249 = vector.shape_cast %248 : vector<8x1xi1> to vector<8x1xi1>
    %250 = vector.broadcast %249 : vector<8x1xi1> to vector<8x32xi1>
    %251 = arith.select %250, %246, %184 : vector<8x32xi1>, vector<8x32xf32>
    %cst_49 = arith.constant dense<0.000000e+00> : vector<8x96xf32>
    %252 = tpu.matmul %220, %9, %cst_49 {dimension_numbers = #tpu.dot_dimension_numbers<[1], [0], [0], [1], [0, 0, 1, 1], [], []>} : vector<8x32xf32>, vector<32x96xf32>, vector<8x96xf32> -> vector<8x96xf32>
    %253 = vector.extract_strided_slice %8 {offsets = [4, 0, 0], sizes = [1, 8, 96], strides = [1, 1, 1]} : vector<8x8x96xf32> to vector<1x8x96xf32>
    %254 = vector.shape_cast %253 : vector<1x8x96xf32> to vector<8x96xf32>
    %255 = vector.extract_strided_slice %254 {offsets = [0, 0], sizes = [8, 32], strides = [1, 1]} : vector<8x96xf32> to vector<8x32xf32>
    %256 = vector.extract_strided_slice %252 {offsets = [0, 0], sizes = [8, 32], strides = [1, 1]} : vector<8x96xf32> to vector<8x32xf32>
    %257 = arith.addf %255, %256 : vector<8x32xf32>
    %258 = arith.negf %257 : vector<8x32xf32>
    %259 = math.exp %258 : vector<8x32xf32>
    %cst_50 = arith.constant 1.000000e+00 : f32
    %260 = vector.broadcast %cst_50 : f32 to vector<8x32xf32>
    %261 = arith.addf %260, %259 : vector<8x32xf32>
    %262 = arith.divf %260, %261 : vector<8x32xf32>
    %263 = vector.extract_strided_slice %254 {offsets = [0, 32], sizes = [8, 32], strides = [1, 1]} : vector<8x96xf32> to vector<8x32xf32>
    %264 = vector.extract_strided_slice %252 {offsets = [0, 32], sizes = [8, 32], strides = [1, 1]} : vector<8x96xf32> to vector<8x32xf32>
    %265 = arith.addf %263, %264 : vector<8x32xf32>
    %266 = arith.negf %265 : vector<8x32xf32>
    %267 = math.exp %266 : vector<8x32xf32>
    %cst_51 = arith.constant 1.000000e+00 : f32
    %268 = vector.broadcast %cst_51 : f32 to vector<8x32xf32>
    %269 = arith.addf %268, %267 : vector<8x32xf32>
    %270 = arith.divf %268, %269 : vector<8x32xf32>
    %271 = vector.extract_strided_slice %254 {offsets = [0, 64], sizes = [8, 32], strides = [1, 1]} : vector<8x96xf32> to vector<8x32xf32>
    %272 = vector.extract_strided_slice %252 {offsets = [0, 64], sizes = [8, 32], strides = [1, 1]} : vector<8x96xf32> to vector<8x32xf32>
    %273 = vector.broadcast %10 : vector<1x32xf32> to vector<8x32xf32>
    %274 = arith.addf %272, %273 : vector<8x32xf32>
    %275 = arith.mulf %262, %274 : vector<8x32xf32>
    %276 = arith.addf %271, %275 : vector<8x32xf32>
    %277 = math.tanh %276 : vector<8x32xf32>
    %cst_52 = arith.constant 1.000000e+00 : f32
    %278 = vector.broadcast %cst_52 : f32 to vector<8x32xf32>
    %279 = arith.subf %278, %270 : vector<8x32xf32>
    %280 = arith.mulf %279, %277 : vector<8x32xf32>
    %281 = arith.mulf %270, %220 : vector<8x32xf32>
    %282 = arith.addf %280, %281 : vector<8x32xf32>
    %c4_i32 = arith.constant 4 : i32
    %283 = vector.broadcast %c4_i32 : i32 to vector<8x1xi32>
    %284 = arith.cmpi sgt, %0, %283 : vector<8x1xi32>
    %285 = vector.shape_cast %284 : vector<8x1xi1> to vector<8x1xi1>
    %286 = vector.broadcast %285 : vector<8x1xi1> to vector<8x32xi1>
    %287 = arith.select %286, %282, %220 : vector<8x32xi1>, vector<8x32xf32>
    %288 = tpu.concatenate %220, %251 in 1 : vector<8x32xf32>, vector<8x32xf32> -> vector<8x64xf32>
    %cst_53 = arith.constant dense<0.000000e+00> : vector<8x128xf32>
    %289 = tpu.matmul %288, %11, %cst_53 {dimension_numbers = #tpu.dot_dimension_numbers<[1], [0], [0], [1], [0, 0, 1, 1], [], []>} : vector<8x64xf32>, vector<64x128xf32>, vector<8x128xf32> -> vector<8x128xf32>
    %290 = vector.broadcast %12 : vector<1x128xf32> to vector<8x128xf32>
    %291 = arith.addf %289, %290 : vector<8x128xf32>
    %292 = vector.extract_strided_slice %291 {offsets = [0, 0], sizes = [8, 32], strides = [1, 1]} : vector<8x128xf32> to vector<8x32xf32>
    %293 = arith.negf %292 : vector<8x32xf32>
    %294 = math.exp %293 : vector<8x32xf32>
    %cst_54 = arith.constant 1.000000e+00 : f32
    %295 = vector.broadcast %cst_54 : f32 to vector<8x32xf32>
    %296 = arith.addf %295, %294 : vector<8x32xf32>
    %297 = arith.divf %295, %296 : vector<8x32xf32>
    %298 = vector.extract_strided_slice %291 {offsets = [0, 32], sizes = [8, 32], strides = [1, 1]} : vector<8x128xf32> to vector<8x32xf32>
    %299 = arith.negf %298 : vector<8x32xf32>
    %300 = math.exp %299 : vector<8x32xf32>
    %cst_55 = arith.constant 1.000000e+00 : f32
    %301 = vector.broadcast %cst_55 : f32 to vector<8x32xf32>
    %302 = arith.addf %301, %300 : vector<8x32xf32>
    %303 = arith.divf %301, %302 : vector<8x32xf32>
    %304 = vector.extract_strided_slice %291 {offsets = [0, 64], sizes = [8, 32], strides = [1, 1]} : vector<8x128xf32> to vector<8x32xf32>
    %305 = vector.extract_strided_slice %291 {offsets = [0, 96], sizes = [8, 32], strides = [1, 1]} : vector<8x128xf32> to vector<8x32xf32>
    %306 = arith.mulf %297, %305 : vector<8x32xf32>
    %307 = arith.addf %304, %306 : vector<8x32xf32>
    %308 = math.tanh %307 : vector<8x32xf32>
    %cst_56 = arith.constant 1.000000e+00 : f32
    %309 = vector.broadcast %cst_56 : f32 to vector<8x32xf32>
    %310 = arith.subf %309, %303 : vector<8x32xf32>
    %311 = arith.mulf %310, %308 : vector<8x32xf32>
    %312 = arith.mulf %303, %251 : vector<8x32xf32>
    %313 = arith.addf %311, %312 : vector<8x32xf32>
    %c3_i32_57 = arith.constant 3 : i32
    %314 = vector.broadcast %c3_i32_57 : i32 to vector<8x1xi32>
    %315 = arith.cmpi sgt, %0, %314 : vector<8x1xi32>
    %316 = vector.shape_cast %315 : vector<8x1xi1> to vector<8x1xi1>
    %317 = vector.broadcast %316 : vector<8x1xi1> to vector<8x32xi1>
    %318 = arith.select %317, %313, %251 : vector<8x32xi1>, vector<8x32xf32>
    %cst_58 = arith.constant dense<0.000000e+00> : vector<8x96xf32>
    %319 = tpu.matmul %287, %9, %cst_58 {dimension_numbers = #tpu.dot_dimension_numbers<[1], [0], [0], [1], [0, 0, 1, 1], [], []>} : vector<8x32xf32>, vector<32x96xf32>, vector<8x96xf32> -> vector<8x96xf32>
    %320 = vector.extract_strided_slice %8 {offsets = [5, 0, 0], sizes = [1, 8, 96], strides = [1, 1, 1]} : vector<8x8x96xf32> to vector<1x8x96xf32>
    %321 = vector.shape_cast %320 : vector<1x8x96xf32> to vector<8x96xf32>
    %322 = vector.extract_strided_slice %321 {offsets = [0, 0], sizes = [8, 32], strides = [1, 1]} : vector<8x96xf32> to vector<8x32xf32>
    %323 = vector.extract_strided_slice %319 {offsets = [0, 0], sizes = [8, 32], strides = [1, 1]} : vector<8x96xf32> to vector<8x32xf32>
    %324 = arith.addf %322, %323 : vector<8x32xf32>
    %325 = arith.negf %324 : vector<8x32xf32>
    %326 = math.exp %325 : vector<8x32xf32>
    %cst_59 = arith.constant 1.000000e+00 : f32
    %327 = vector.broadcast %cst_59 : f32 to vector<8x32xf32>
    %328 = arith.addf %327, %326 : vector<8x32xf32>
    %329 = arith.divf %327, %328 : vector<8x32xf32>
    %330 = vector.extract_strided_slice %321 {offsets = [0, 32], sizes = [8, 32], strides = [1, 1]} : vector<8x96xf32> to vector<8x32xf32>
    %331 = vector.extract_strided_slice %319 {offsets = [0, 32], sizes = [8, 32], strides = [1, 1]} : vector<8x96xf32> to vector<8x32xf32>
    %332 = arith.addf %330, %331 : vector<8x32xf32>
    %333 = arith.negf %332 : vector<8x32xf32>
    %334 = math.exp %333 : vector<8x32xf32>
    %cst_60 = arith.constant 1.000000e+00 : f32
    %335 = vector.broadcast %cst_60 : f32 to vector<8x32xf32>
    %336 = arith.addf %335, %334 : vector<8x32xf32>
    %337 = arith.divf %335, %336 : vector<8x32xf32>
    %338 = vector.extract_strided_slice %321 {offsets = [0, 64], sizes = [8, 32], strides = [1, 1]} : vector<8x96xf32> to vector<8x32xf32>
    %339 = vector.extract_strided_slice %319 {offsets = [0, 64], sizes = [8, 32], strides = [1, 1]} : vector<8x96xf32> to vector<8x32xf32>
    %340 = vector.broadcast %10 : vector<1x32xf32> to vector<8x32xf32>
    %341 = arith.addf %339, %340 : vector<8x32xf32>
    %342 = arith.mulf %329, %341 : vector<8x32xf32>
    %343 = arith.addf %338, %342 : vector<8x32xf32>
    %344 = math.tanh %343 : vector<8x32xf32>
    %cst_61 = arith.constant 1.000000e+00 : f32
    %345 = vector.broadcast %cst_61 : f32 to vector<8x32xf32>
    %346 = arith.subf %345, %337 : vector<8x32xf32>
    %347 = arith.mulf %346, %344 : vector<8x32xf32>
    %348 = arith.mulf %337, %287 : vector<8x32xf32>
    %349 = arith.addf %347, %348 : vector<8x32xf32>
    %c5_i32 = arith.constant 5 : i32
    %350 = vector.broadcast %c5_i32 : i32 to vector<8x1xi32>
    %351 = arith.cmpi sgt, %0, %350 : vector<8x1xi32>
    %352 = vector.shape_cast %351 : vector<8x1xi1> to vector<8x1xi1>
    %353 = vector.broadcast %352 : vector<8x1xi1> to vector<8x32xi1>
    %354 = arith.select %353, %349, %287 : vector<8x32xi1>, vector<8x32xf32>
    %355 = tpu.concatenate %287, %318 in 1 : vector<8x32xf32>, vector<8x32xf32> -> vector<8x64xf32>
    %cst_62 = arith.constant dense<0.000000e+00> : vector<8x128xf32>
    %356 = tpu.matmul %355, %11, %cst_62 {dimension_numbers = #tpu.dot_dimension_numbers<[1], [0], [0], [1], [0, 0, 1, 1], [], []>} : vector<8x64xf32>, vector<64x128xf32>, vector<8x128xf32> -> vector<8x128xf32>
    %357 = vector.broadcast %12 : vector<1x128xf32> to vector<8x128xf32>
    %358 = arith.addf %356, %357 : vector<8x128xf32>
    %359 = vector.extract_strided_slice %358 {offsets = [0, 0], sizes = [8, 32], strides = [1, 1]} : vector<8x128xf32> to vector<8x32xf32>
    %360 = arith.negf %359 : vector<8x32xf32>
    %361 = math.exp %360 : vector<8x32xf32>
    %cst_63 = arith.constant 1.000000e+00 : f32
    %362 = vector.broadcast %cst_63 : f32 to vector<8x32xf32>
    %363 = arith.addf %362, %361 : vector<8x32xf32>
    %364 = arith.divf %362, %363 : vector<8x32xf32>
    %365 = vector.extract_strided_slice %358 {offsets = [0, 32], sizes = [8, 32], strides = [1, 1]} : vector<8x128xf32> to vector<8x32xf32>
    %366 = arith.negf %365 : vector<8x32xf32>
    %367 = math.exp %366 : vector<8x32xf32>
    %cst_64 = arith.constant 1.000000e+00 : f32
    %368 = vector.broadcast %cst_64 : f32 to vector<8x32xf32>
    %369 = arith.addf %368, %367 : vector<8x32xf32>
    %370 = arith.divf %368, %369 : vector<8x32xf32>
    %371 = vector.extract_strided_slice %358 {offsets = [0, 64], sizes = [8, 32], strides = [1, 1]} : vector<8x128xf32> to vector<8x32xf32>
    %372 = vector.extract_strided_slice %358 {offsets = [0, 96], sizes = [8, 32], strides = [1, 1]} : vector<8x128xf32> to vector<8x32xf32>
    %373 = arith.mulf %364, %372 : vector<8x32xf32>
    %374 = arith.addf %371, %373 : vector<8x32xf32>
    %375 = math.tanh %374 : vector<8x32xf32>
    %cst_65 = arith.constant 1.000000e+00 : f32
    %376 = vector.broadcast %cst_65 : f32 to vector<8x32xf32>
    %377 = arith.subf %376, %370 : vector<8x32xf32>
    %378 = arith.mulf %377, %375 : vector<8x32xf32>
    %379 = arith.mulf %370, %318 : vector<8x32xf32>
    %380 = arith.addf %378, %379 : vector<8x32xf32>
    %c4_i32_66 = arith.constant 4 : i32
    %381 = vector.broadcast %c4_i32_66 : i32 to vector<8x1xi32>
    %382 = arith.cmpi sgt, %0, %381 : vector<8x1xi32>
    %383 = vector.shape_cast %382 : vector<8x1xi1> to vector<8x1xi1>
    %384 = vector.broadcast %383 : vector<8x1xi1> to vector<8x32xi1>
    %385 = arith.select %384, %380, %318 : vector<8x32xi1>, vector<8x32xf32>
    %cst_67 = arith.constant dense<0.000000e+00> : vector<8x96xf32>
    %386 = tpu.matmul %354, %9, %cst_67 {dimension_numbers = #tpu.dot_dimension_numbers<[1], [0], [0], [1], [0, 0, 1, 1], [], []>} : vector<8x32xf32>, vector<32x96xf32>, vector<8x96xf32> -> vector<8x96xf32>
    %387 = vector.extract_strided_slice %8 {offsets = [6, 0, 0], sizes = [1, 8, 96], strides = [1, 1, 1]} : vector<8x8x96xf32> to vector<1x8x96xf32>
    %388 = vector.shape_cast %387 : vector<1x8x96xf32> to vector<8x96xf32>
    %389 = vector.extract_strided_slice %388 {offsets = [0, 0], sizes = [8, 32], strides = [1, 1]} : vector<8x96xf32> to vector<8x32xf32>
    %390 = vector.extract_strided_slice %386 {offsets = [0, 0], sizes = [8, 32], strides = [1, 1]} : vector<8x96xf32> to vector<8x32xf32>
    %391 = arith.addf %389, %390 : vector<8x32xf32>
    %392 = arith.negf %391 : vector<8x32xf32>
    %393 = math.exp %392 : vector<8x32xf32>
    %cst_68 = arith.constant 1.000000e+00 : f32
    %394 = vector.broadcast %cst_68 : f32 to vector<8x32xf32>
    %395 = arith.addf %394, %393 : vector<8x32xf32>
    %396 = arith.divf %394, %395 : vector<8x32xf32>
    %397 = vector.extract_strided_slice %388 {offsets = [0, 32], sizes = [8, 32], strides = [1, 1]} : vector<8x96xf32> to vector<8x32xf32>
    %398 = vector.extract_strided_slice %386 {offsets = [0, 32], sizes = [8, 32], strides = [1, 1]} : vector<8x96xf32> to vector<8x32xf32>
    %399 = arith.addf %397, %398 : vector<8x32xf32>
    %400 = arith.negf %399 : vector<8x32xf32>
    %401 = math.exp %400 : vector<8x32xf32>
    %cst_69 = arith.constant 1.000000e+00 : f32
    %402 = vector.broadcast %cst_69 : f32 to vector<8x32xf32>
    %403 = arith.addf %402, %401 : vector<8x32xf32>
    %404 = arith.divf %402, %403 : vector<8x32xf32>
    %405 = vector.extract_strided_slice %388 {offsets = [0, 64], sizes = [8, 32], strides = [1, 1]} : vector<8x96xf32> to vector<8x32xf32>
    %406 = vector.extract_strided_slice %386 {offsets = [0, 64], sizes = [8, 32], strides = [1, 1]} : vector<8x96xf32> to vector<8x32xf32>
    %407 = vector.broadcast %10 : vector<1x32xf32> to vector<8x32xf32>
    %408 = arith.addf %406, %407 : vector<8x32xf32>
    %409 = arith.mulf %396, %408 : vector<8x32xf32>
    %410 = arith.addf %405, %409 : vector<8x32xf32>
    %411 = math.tanh %410 : vector<8x32xf32>
    %cst_70 = arith.constant 1.000000e+00 : f32
    %412 = vector.broadcast %cst_70 : f32 to vector<8x32xf32>
    %413 = arith.subf %412, %404 : vector<8x32xf32>
    %414 = arith.mulf %413, %411 : vector<8x32xf32>
    %415 = arith.mulf %404, %354 : vector<8x32xf32>
    %416 = arith.addf %414, %415 : vector<8x32xf32>
    %c6_i32 = arith.constant 6 : i32
    %417 = vector.broadcast %c6_i32 : i32 to vector<8x1xi32>
    %418 = arith.cmpi sgt, %0, %417 : vector<8x1xi32>
    %419 = vector.shape_cast %418 : vector<8x1xi1> to vector<8x1xi1>
    %420 = vector.broadcast %419 : vector<8x1xi1> to vector<8x32xi1>
    %421 = arith.select %420, %416, %354 : vector<8x32xi1>, vector<8x32xf32>
    %422 = tpu.concatenate %354, %385 in 1 : vector<8x32xf32>, vector<8x32xf32> -> vector<8x64xf32>
    %cst_71 = arith.constant dense<0.000000e+00> : vector<8x128xf32>
    %423 = tpu.matmul %422, %11, %cst_71 {dimension_numbers = #tpu.dot_dimension_numbers<[1], [0], [0], [1], [0, 0, 1, 1], [], []>} : vector<8x64xf32>, vector<64x128xf32>, vector<8x128xf32> -> vector<8x128xf32>
    %424 = vector.broadcast %12 : vector<1x128xf32> to vector<8x128xf32>
    %425 = arith.addf %423, %424 : vector<8x128xf32>
    %426 = vector.extract_strided_slice %425 {offsets = [0, 0], sizes = [8, 32], strides = [1, 1]} : vector<8x128xf32> to vector<8x32xf32>
    %427 = arith.negf %426 : vector<8x32xf32>
    %428 = math.exp %427 : vector<8x32xf32>
    %cst_72 = arith.constant 1.000000e+00 : f32
    %429 = vector.broadcast %cst_72 : f32 to vector<8x32xf32>
    %430 = arith.addf %429, %428 : vector<8x32xf32>
    %431 = arith.divf %429, %430 : vector<8x32xf32>
    %432 = vector.extract_strided_slice %425 {offsets = [0, 32], sizes = [8, 32], strides = [1, 1]} : vector<8x128xf32> to vector<8x32xf32>
    %433 = arith.negf %432 : vector<8x32xf32>
    %434 = math.exp %433 : vector<8x32xf32>
    %cst_73 = arith.constant 1.000000e+00 : f32
    %435 = vector.broadcast %cst_73 : f32 to vector<8x32xf32>
    %436 = arith.addf %435, %434 : vector<8x32xf32>
    %437 = arith.divf %435, %436 : vector<8x32xf32>
    %438 = vector.extract_strided_slice %425 {offsets = [0, 64], sizes = [8, 32], strides = [1, 1]} : vector<8x128xf32> to vector<8x32xf32>
    %439 = vector.extract_strided_slice %425 {offsets = [0, 96], sizes = [8, 32], strides = [1, 1]} : vector<8x128xf32> to vector<8x32xf32>
    %440 = arith.mulf %431, %439 : vector<8x32xf32>
    %441 = arith.addf %438, %440 : vector<8x32xf32>
    %442 = math.tanh %441 : vector<8x32xf32>
    %cst_74 = arith.constant 1.000000e+00 : f32
    %443 = vector.broadcast %cst_74 : f32 to vector<8x32xf32>
    %444 = arith.subf %443, %437 : vector<8x32xf32>
    %445 = arith.mulf %444, %442 : vector<8x32xf32>
    %446 = arith.mulf %437, %385 : vector<8x32xf32>
    %447 = arith.addf %445, %446 : vector<8x32xf32>
    %c5_i32_75 = arith.constant 5 : i32
    %448 = vector.broadcast %c5_i32_75 : i32 to vector<8x1xi32>
    %449 = arith.cmpi sgt, %0, %448 : vector<8x1xi32>
    %450 = vector.shape_cast %449 : vector<8x1xi1> to vector<8x1xi1>
    %451 = vector.broadcast %450 : vector<8x1xi1> to vector<8x32xi1>
    %452 = arith.select %451, %447, %385 : vector<8x32xi1>, vector<8x32xf32>
    %cst_76 = arith.constant dense<0.000000e+00> : vector<8x96xf32>
    %453 = tpu.matmul %421, %9, %cst_76 {dimension_numbers = #tpu.dot_dimension_numbers<[1], [0], [0], [1], [0, 0, 1, 1], [], []>} : vector<8x32xf32>, vector<32x96xf32>, vector<8x96xf32> -> vector<8x96xf32>
    %454 = vector.extract_strided_slice %8 {offsets = [7, 0, 0], sizes = [1, 8, 96], strides = [1, 1, 1]} : vector<8x8x96xf32> to vector<1x8x96xf32>
    %455 = vector.shape_cast %454 : vector<1x8x96xf32> to vector<8x96xf32>
    %456 = vector.extract_strided_slice %455 {offsets = [0, 0], sizes = [8, 32], strides = [1, 1]} : vector<8x96xf32> to vector<8x32xf32>
    %457 = vector.extract_strided_slice %453 {offsets = [0, 0], sizes = [8, 32], strides = [1, 1]} : vector<8x96xf32> to vector<8x32xf32>
    %458 = arith.addf %456, %457 : vector<8x32xf32>
    %459 = arith.negf %458 : vector<8x32xf32>
    %460 = math.exp %459 : vector<8x32xf32>
    %cst_77 = arith.constant 1.000000e+00 : f32
    %461 = vector.broadcast %cst_77 : f32 to vector<8x32xf32>
    %462 = arith.addf %461, %460 : vector<8x32xf32>
    %463 = arith.divf %461, %462 : vector<8x32xf32>
    %464 = vector.extract_strided_slice %455 {offsets = [0, 32], sizes = [8, 32], strides = [1, 1]} : vector<8x96xf32> to vector<8x32xf32>
    %465 = vector.extract_strided_slice %453 {offsets = [0, 32], sizes = [8, 32], strides = [1, 1]} : vector<8x96xf32> to vector<8x32xf32>
    %466 = arith.addf %464, %465 : vector<8x32xf32>
    %467 = arith.negf %466 : vector<8x32xf32>
    %468 = math.exp %467 : vector<8x32xf32>
    %cst_78 = arith.constant 1.000000e+00 : f32
    %469 = vector.broadcast %cst_78 : f32 to vector<8x32xf32>
    %470 = arith.addf %469, %468 : vector<8x32xf32>
    %471 = arith.divf %469, %470 : vector<8x32xf32>
    %472 = vector.extract_strided_slice %455 {offsets = [0, 64], sizes = [8, 32], strides = [1, 1]} : vector<8x96xf32> to vector<8x32xf32>
    %473 = vector.extract_strided_slice %453 {offsets = [0, 64], sizes = [8, 32], strides = [1, 1]} : vector<8x96xf32> to vector<8x32xf32>
    %474 = vector.broadcast %10 : vector<1x32xf32> to vector<8x32xf32>
    %475 = arith.addf %473, %474 : vector<8x32xf32>
    %476 = arith.mulf %463, %475 : vector<8x32xf32>
    %477 = arith.addf %472, %476 : vector<8x32xf32>
    %478 = math.tanh %477 : vector<8x32xf32>
    %cst_79 = arith.constant 1.000000e+00 : f32
    %479 = vector.broadcast %cst_79 : f32 to vector<8x32xf32>
    %480 = arith.subf %479, %471 : vector<8x32xf32>
    %481 = arith.mulf %480, %478 : vector<8x32xf32>
    %482 = arith.mulf %471, %421 : vector<8x32xf32>
    %483 = arith.addf %481, %482 : vector<8x32xf32>
    %c7_i32 = arith.constant 7 : i32
    %484 = vector.broadcast %c7_i32 : i32 to vector<8x1xi32>
    %485 = arith.cmpi sgt, %0, %484 : vector<8x1xi32>
    %486 = vector.shape_cast %485 : vector<8x1xi1> to vector<8x1xi1>
    %487 = vector.broadcast %486 : vector<8x1xi1> to vector<8x32xi1>
    %488 = arith.select %487, %483, %421 : vector<8x32xi1>, vector<8x32xf32>
    %489 = tpu.concatenate %421, %452 in 1 : vector<8x32xf32>, vector<8x32xf32> -> vector<8x64xf32>
    %cst_80 = arith.constant dense<0.000000e+00> : vector<8x128xf32>
    %490 = tpu.matmul %489, %11, %cst_80 {dimension_numbers = #tpu.dot_dimension_numbers<[1], [0], [0], [1], [0, 0, 1, 1], [], []>} : vector<8x64xf32>, vector<64x128xf32>, vector<8x128xf32> -> vector<8x128xf32>
    %491 = vector.broadcast %12 : vector<1x128xf32> to vector<8x128xf32>
    %492 = arith.addf %490, %491 : vector<8x128xf32>
    %493 = vector.extract_strided_slice %492 {offsets = [0, 0], sizes = [8, 32], strides = [1, 1]} : vector<8x128xf32> to vector<8x32xf32>
    %494 = arith.negf %493 : vector<8x32xf32>
    %495 = math.exp %494 : vector<8x32xf32>
    %cst_81 = arith.constant 1.000000e+00 : f32
    %496 = vector.broadcast %cst_81 : f32 to vector<8x32xf32>
    %497 = arith.addf %496, %495 : vector<8x32xf32>
    %498 = arith.divf %496, %497 : vector<8x32xf32>
    %499 = vector.extract_strided_slice %492 {offsets = [0, 32], sizes = [8, 32], strides = [1, 1]} : vector<8x128xf32> to vector<8x32xf32>
    %500 = arith.negf %499 : vector<8x32xf32>
    %501 = math.exp %500 : vector<8x32xf32>
    %cst_82 = arith.constant 1.000000e+00 : f32
    %502 = vector.broadcast %cst_82 : f32 to vector<8x32xf32>
    %503 = arith.addf %502, %501 : vector<8x32xf32>
    %504 = arith.divf %502, %503 : vector<8x32xf32>
    %505 = vector.extract_strided_slice %492 {offsets = [0, 64], sizes = [8, 32], strides = [1, 1]} : vector<8x128xf32> to vector<8x32xf32>
    %506 = vector.extract_strided_slice %492 {offsets = [0, 96], sizes = [8, 32], strides = [1, 1]} : vector<8x128xf32> to vector<8x32xf32>
    %507 = arith.mulf %498, %506 : vector<8x32xf32>
    %508 = arith.addf %505, %507 : vector<8x32xf32>
    %509 = math.tanh %508 : vector<8x32xf32>
    %cst_83 = arith.constant 1.000000e+00 : f32
    %510 = vector.broadcast %cst_83 : f32 to vector<8x32xf32>
    %511 = arith.subf %510, %504 : vector<8x32xf32>
    %512 = arith.mulf %511, %509 : vector<8x32xf32>
    %513 = arith.mulf %504, %452 : vector<8x32xf32>
    %514 = arith.addf %512, %513 : vector<8x32xf32>
    %c6_i32_84 = arith.constant 6 : i32
    %515 = vector.broadcast %c6_i32_84 : i32 to vector<8x1xi32>
    %516 = arith.cmpi sgt, %0, %515 : vector<8x1xi32>
    %517 = vector.shape_cast %516 : vector<8x1xi1> to vector<8x1xi1>
    %518 = vector.broadcast %517 : vector<8x1xi1> to vector<8x32xi1>
    %519 = arith.select %518, %514, %452 : vector<8x32xi1>, vector<8x32xf32>
    %520 = tpu.concatenate %488, %519 in 1 : vector<8x32xf32>, vector<8x32xf32> -> vector<8x64xf32>
    %cst_85 = arith.constant dense<0.000000e+00> : vector<8x128xf32>
    %521 = tpu.matmul %520, %11, %cst_85 {dimension_numbers = #tpu.dot_dimension_numbers<[1], [0], [0], [1], [0, 0, 1, 1], [], []>} : vector<8x64xf32>, vector<64x128xf32>, vector<8x128xf32> -> vector<8x128xf32>
    %522 = vector.broadcast %12 : vector<1x128xf32> to vector<8x128xf32>
    %523 = arith.addf %521, %522 : vector<8x128xf32>
    %524 = vector.extract_strided_slice %523 {offsets = [0, 0], sizes = [8, 32], strides = [1, 1]} : vector<8x128xf32> to vector<8x32xf32>
    %525 = arith.negf %524 : vector<8x32xf32>
    %526 = math.exp %525 : vector<8x32xf32>
    %cst_86 = arith.constant 1.000000e+00 : f32
    %527 = vector.broadcast %cst_86 : f32 to vector<8x32xf32>
    %528 = arith.addf %527, %526 : vector<8x32xf32>
    %529 = arith.divf %527, %528 : vector<8x32xf32>
    %530 = vector.extract_strided_slice %523 {offsets = [0, 32], sizes = [8, 32], strides = [1, 1]} : vector<8x128xf32> to vector<8x32xf32>
    %531 = arith.negf %530 : vector<8x32xf32>
    %532 = math.exp %531 : vector<8x32xf32>
    %cst_87 = arith.constant 1.000000e+00 : f32
    %533 = vector.broadcast %cst_87 : f32 to vector<8x32xf32>
    %534 = arith.addf %533, %532 : vector<8x32xf32>
    %535 = arith.divf %533, %534 : vector<8x32xf32>
    %536 = vector.extract_strided_slice %523 {offsets = [0, 64], sizes = [8, 32], strides = [1, 1]} : vector<8x128xf32> to vector<8x32xf32>
    %537 = vector.extract_strided_slice %523 {offsets = [0, 96], sizes = [8, 32], strides = [1, 1]} : vector<8x128xf32> to vector<8x32xf32>
    %538 = arith.mulf %529, %537 : vector<8x32xf32>
    %539 = arith.addf %536, %538 : vector<8x32xf32>
    %540 = math.tanh %539 : vector<8x32xf32>
    %cst_88 = arith.constant 1.000000e+00 : f32
    %541 = vector.broadcast %cst_88 : f32 to vector<8x32xf32>
    %542 = arith.subf %541, %535 : vector<8x32xf32>
    %543 = arith.mulf %542, %540 : vector<8x32xf32>
    %544 = arith.mulf %535, %519 : vector<8x32xf32>
    %545 = arith.addf %543, %544 : vector<8x32xf32>
    %c7_i32_89 = arith.constant 7 : i32
    %546 = vector.broadcast %c7_i32_89 : i32 to vector<8x1xi32>
    %547 = arith.cmpi sgt, %0, %546 : vector<8x1xi32>
    %548 = vector.shape_cast %547 : vector<8x1xi1> to vector<8x1xi1>
    %549 = vector.broadcast %548 : vector<8x1xi1> to vector<8x32xi1>
    %550 = arith.select %549, %545, %519 : vector<8x32xi1>, vector<8x32xf32>
    %c0_90 = arith.constant 0 : index
    %c0_91 = arith.constant 0 : index
    %c0_92 = arith.constant 0 : index
    %551 = vector.load %arg11[%c0_90, %c0_91, %c0_92] : memref<2x8x32xf32, #tpu.memory_space<vmem>>, vector<1x8x32xf32>
    %552 = vector.shape_cast %551 : vector<1x8x32xf32> to vector<8x32xf32>
    %553 = vector.shape_cast %488 : vector<8x32xf32> to vector<1x8x32xf32>
    tpu.vector_store %arg11[%c0_90, %c0_91, %c0_92], %553 {strides = array<i32>} : memref<2x8x32xf32, #tpu.memory_space<vmem>>, vector<1x8x32xf32>,
    %c1 = arith.constant 1 : index
    %c0_93 = arith.constant 0 : index
    %c0_94 = arith.constant 0 : index
    %554 = vector.load %arg11[%c1, %c0_93, %c0_94] : memref<2x8x32xf32, #tpu.memory_space<vmem>>, vector<1x8x32xf32>
    %555 = vector.shape_cast %554 : vector<1x8x32xf32> to vector<8x32xf32>
    %556 = vector.shape_cast %550 : vector<8x32xf32> to vector<1x8x32xf32>
    tpu.vector_store %arg11[%c1, %c0_93, %c0_94], %556 {strides = array<i32>} : memref<2x8x32xf32, #tpu.memory_space<vmem>>, vector<1x8x32xf32>,
    %c0_95 = arith.constant 0 : index
    %c0_96 = arith.constant 0 : index
    %557 = vector.load %arg8[%c0_95, %c0_96] : memref<32x16xf32, #tpu.memory_space<vmem>>, vector<32x16xf32>
    %cst_97 = arith.constant dense<0.000000e+00> : vector<8x16xf32>
    %558 = tpu.matmul %550, %557, %cst_97 {dimension_numbers = #tpu.dot_dimension_numbers<[1], [0], [0], [1], [0, 0, 1, 1], [], []>} : vector<8x32xf32>, vector<32x16xf32>, vector<8x16xf32> -> vector<8x16xf32>
    %c0_98 = arith.constant 0 : index
    %c0_99 = arith.constant 0 : index
    %559 = vector.load %arg9[%c0_98, %c0_99] : memref<1x16xf32, #tpu.memory_space<vmem>>, vector<1x16xf32>
    %560 = vector.broadcast %559 : vector<1x16xf32> to vector<8x16xf32>
    %561 = arith.addf %558, %560 : vector<8x16xf32>
    %cst_100 = arith.constant 0.000000e+00 : f32
    %562 = vector.broadcast %cst_100 : f32 to vector<8x16xf32>
    %563 = arith.cmpf oge, %561, %562 : vector<8x16xf32>
    %cst_101 = arith.constant 1.000000e-01 : f32
    %564 = vector.broadcast %cst_101 : f32 to vector<8x16xf32>
    %565 = arith.mulf %564, %561 : vector<8x16xf32>
    %566 = arith.select %563, %561, %565 : vector<8x16xi1>, vector<8x16xf32>
    %c0_102 = arith.constant 0 : index
    %c0_103 = arith.constant 0 : index
    %567 = vector.load %arg10[%c0_102, %c0_103] : memref<8x16xf32, #tpu.memory_space<vmem>>, vector<8x16xf32>
    tpu.vector_store %arg10[%c0_102, %c0_103], %566 {strides = array<i32>} : memref<8x16xf32, #tpu.memory_space<vmem>>, vector<8x16xf32>,
    return
  }
}

</mosaic_0001>

<bundles_post_ra>
// kernel: tpu_custom_call.1
= control target key start
LH: loop header
LB: loop body
LE: loop exit
PB: predicated region body
PF: predicated region fallthrough
CT: control target
= control target key end

     0   :  { %17 = vsyncpa [#allocation3], 0  ;;  %s3522_s0 = inlined_call_operand.vmem [shape: s32[8,1], index: 0, kind: input, shape index: {}]   ;;  %s3523_s1 = inlined_call_operand.hbm [shape: f32[8,8,16], index: 1, kind: input, shape index: {}]   ;;  %s3524_s2 = inlined_call_operand.hbm [shape: f32[16,96], index: 2, kind: input, shape index: {}]   ;;  %s3525_s3 = inlined_call_operand.hbm [shape: f32[32,96], index: 3, kind: input, shape index: {}]   ;;  %s3526_s4 = inlined_call_operand.vmem [shape: f32[1,96], index: 4, kind: input, shape index: {}]   ;;  %s3527_s5 = inlined_call_operand.vmem [shape: f32[1,32], index: 5, kind: input, shape index: {}]   ;;  %s3528_s6 = inlined_call_operand.vmem [shape: f32[64,128], index: 6, kind: input, shape index: {}]   ;;  %s3529_s7 = inlined_call_operand.vmem [shape: f32[1,128], index: 7, kind: input, shape index: {}]   ;;  %s3530_s8 = inlined_call_operand.vmem [shape: f32[32,16], index: 8, kind: input, shape index: {}]   ;;  %s3531_s9 = inlined_call_operand.vmem [shape: f32[1,16], index: 9, kind: input, shape index: {}]   ;;  %s3532_s10 = inlined_call_operand.hbm [shape: f32[8,16], index: 10, kind: output, shape index: {0}]   ;;  %s3533_s11 = inlined_call_operand.hbm [shape: f32[2,8,32], index: 11, kind: output, shape index: {1}]  }
   0x1   :  { %18 = vsyncpa [#allocation6], 0 }
   0x2   :  { %19 = vsyncpa [#allocation4], 0 }
   0x3   :  { %20 = vsyncpa [#allocation10], 0  ;;  %s2889_s17 = smov [#allocation5]   ;;  %s2890_s19 = smov [#allocation2]  }
   0x4   :  { %s40_s18 = sshll.u32 %s2889_s17, 4  ;;  %s28_s20 = sshll.u32 %s2890_s19, 4  ;;  %s41_s18 = int_to_ptr.vmem [resolvable:$true] %s40_s18  ;;  %s2963_s20 = int_to_ptr.vmem [resolvable:$true] %s28_s20 }
   0x5   :  { %s2771_s23 = scalar_lea.hbm %s3524_s2, 256 }
   0x6   :  { %p2772_p0 = scmp.ne.s32.totalorder %s3524_s2, %s2771_s23  ;;  %p2775_p1 = scmp.lt.u32.totalorder %s2771_s23, %s3524_s2 }
   0x8   :  { %p2777_p2 = pnand %p2775_p1, %p2772_p0 }
   0xa   :  { %2780 = shalt.err (!%p2777_p2)
}
   0xb   :  { %s2781_s28 = scalar_lea.vmem %s41_s18, 256  ;;  %p2786_p4 = scmp.lt.s32.totalorder %s41_s18, %s41_s18 }
   0xc   :  { %p2782_p3 = scmp.ne.s32.totalorder %s41_s18, %s2781_s28  ;;  %p2787_p5 = scmp.lt.s32.totalorder %s2781_s28, %s2781_s28 }
   0xe   :  { %p2788_p6 = por %p2787_p5, %p2786_p4 }
  0x10   :  { %p2789_p7 = pnand %p2788_p6, %p2782_p3 }
  0x12   :  { %2792 = shalt.err (!%p2789_p7)
}
  0x13   :  { %s2891_s29 = smov 128   ;;  %s2892_s30 = smov 8  }
  0x14   :  { %46 = dma.hbm_to_vmem [thread:$0]  %s3524_s2, 256, %s41_s18, [#allocation6], %s2891_s29, %s2891_s29, %s2892_s30  }
  0x15   :  { %s2793_s16 = scalar_lea.hbm %s3523_s1, 1024 }
  0x16   :  { %p2794_p8 = scmp.ne.s32.totalorder %s3523_s1, %s2793_s16  ;;  %p2797_p9 = scmp.lt.u32.totalorder %s2793_s16, %s3523_s1 }
  0x18   :  { %p2799_p10 = pnand %p2797_p9, %p2794_p8 }
  0x1a   :  { %2802 = shalt.err (!%p2799_p10)
}
  0x1b   :  { %s2803_s23 = scalar_lea.vmem %s2963_s20, 1024  ;;  %p2808_p12 = scmp.lt.s32.totalorder %s2963_s20, %s2963_s20 }
  0x1c   :  { %p2804_p11 = scmp.ne.s32.totalorder %s2963_s20, %s2803_s23  ;;  %p2809_p13 = scmp.lt.s32.totalorder %s2803_s23, %s2803_s23 }
  0x1e   :  { %p2810_p0 = por %p2809_p13, %p2808_p12 }
  0x20   :  { %p2811_p1 = pnand %p2810_p0, %p2804_p11 }
  0x22   :  { %2814 = shalt.err (!%p2811_p1)
}
  0x23   :  { %34 = dma.hbm_to_vmem [thread:$0]  %s3523_s1, 1024, %s2963_s20, [#allocation3], %s2891_s29, %s2891_s29, %s2892_s30  }
  0x24   :  { %s2893_s24 = smov [#allocation7]   ;;  %s2815_s28 = scalar_lea.hbm %s3525_s3, 512 }
  0x25   :  { %s52_s25 = sshll.u32 %s2893_s24, 4  ;;  %p2816_p2 = scmp.ne.s32.totalorder %s3525_s3, %s2815_s28  ;;  %s53_s25 = int_to_ptr.vmem [resolvable:$true] %s52_s25 }
  0x26   :  { %p2819_p3 = scmp.lt.u32.totalorder %s2815_s28, %s3525_s3 }
  0x28   :  { %p2821_p4 = pnand %p2819_p3, %p2816_p2 }
  0x2a   :  { %2824 = shalt.err (!%p2821_p4)
}
  0x2b   :  { %s2825_s16 = scalar_lea.vmem %s53_s25, 512  ;;  %p2830_p6 = scmp.lt.s32.totalorder %s53_s25, %s53_s25 }
  0x2c   :  { %p2826_p5 = scmp.ne.s32.totalorder %s53_s25, %s2825_s16  ;;  %p2831_p7 = scmp.lt.s32.totalorder %s2825_s16, %s2825_s16 }
  0x2e   :  { %p2832_p8 = por %p2831_p7, %p2830_p6 }
  0x30   :  { %p2833_p9 = pnand %p2832_p8, %p2826_p5 }
  0x32   :  { %2836 = shalt.err (!%p2833_p9)
}
  0x33   :  { %58 = dma.hbm_to_vmem [thread:$0]  %s3525_s3, 512, %s53_s25, [#allocation6], %s2891_s29, %s2891_s29, %s2892_s30  }
  0x34   :  { %2881 = dma.done.wait [#allocation3], 1024  }
  0x35   :  { %2882 = vsyncadd [#allocation3], 4294966272 }
  0x36   :  { %2883 = dma.done.wait [#allocation6], 768  }
  0x37   :  { %2884 = vsyncadd [#allocation6], 4294966528  ;;  %v2894_v0 = vmov 0.0|0.0   ;;  %vm2895_vm0 = vmmov 0   ;;  %v2896_v1 = vmov 0.0   ;;  %vm98_vm1 = vcmask 130048  }
  0x38   :  { %2507 = vmatprep.subr.bf16.mxu1 %v2894_v0  ;;  %2260 = vmatprep.mubr.msk.f32.mxu1 %vm2895_vm0, %v2896_v1  ;;  %v89_v2 = vld [vmem:[#allocation5] sm:$0xff]  ;;  %v90_v3 = vld [vmem:[#allocation5 + $0x8] sm:$0xff]  ;;  %v228_v4 = vld [vmem:[#allocation7] sm:$0xff]  ;;  %s2897_s19 = smov 64   ;;  %v2898_v26 = vmov 0   ;;  %s2899_s1 = smov 96  }
  0x39   :  { %v2503_v5 = vpack.c.bf16 %v90_v3, %v89_v2  ;;  %v229_v6 = vld [vmem:[#allocation7 + $0x8] sm:$0xff]  ;;  %v81_v7 = vld [vmem:[#allocation2] sm:$0xff]  ;;  %v231_v10 = vld [vmem:[#allocation7 + $0x18] sm:$0xff]  ;;  %2671 = vset.pattern.permute.xlu1 %v2898_v26  ;;  %2672 = vset.pattern.permute.xlu0 %v2898_v26  ;;  %vm242_vm4 = vcmask 261120   ;;  %vm475_vm5 = vcmask 523264   ;;  %s2900_s22 = smov 32  }
  0x3a   :  { %v3018_v8 = vpack.c.bf16 %v229_v6, %v228_v4  ;;  %2240 = vmatprep.mubr.msk.f32.mxu0 %vm98_vm1, %v81_v7  ;;  %v230_v9 = vld [vmem:[#allocation7 + $0x10] sm:$0xff]  ;;  %v2075_v11 = vld [vmem:[%s3527_s5] ss:$0 sm:$0xff]  ;;  %v234_v35 = vld [vmem:[%s3528_s6 + $0x8] sm:$0xff] }
  0x3b   :  { %2504 = vmatprep.subr.bf16.mxu0 %v2503_v5  ;;  %328 = vrot.lane.b32.xlu0 %v2075_v11, %s2897_s19  ;;  %v82_v12 = vld [vmem:[#allocation2 + $0x8] sm:$0xff]  ;;  %v3026_v13 = vpack.c.bf16 %v231_v10, %v230_v9  ;;  %v83_v36 = vld [vmem:[#allocation2 + $0x10] sm:$0xff]  ;;  %v84_v38 = vld [vmem:[#allocation2 + $0x18] sm:$0xff] }
  0x3c   :  { %2509 = vmatpush3.bf16.msra.mxu1 %v3018_v8  ;;  %2506 = vmatpush3.bf16.msra.mxu0 %v2503_v5  ;;  %v3049_v20 = vld [vmem:[%s3526_s4] ss:$0 sm:$0xff]  ;;  %v235_v39 = vld [vmem:[%s3528_s6 + $0x10] sm:$0xff]  ;;  %v236_v40 = vld [vmem:[%s3528_s6 + $0x18] sm:$0xff] }
  0x3d   :  { %2510 = vmatprep.subr.bf16.mxu1 %v2894_v0  ;;  %2519 = vmatprep.subr.bf16.mxu0 %v2894_v0  ;;  %v3057_v27 = vld [vmem:[%s3522_s0] sm:$0xff]  ;;  %v85_v41 = vld [vmem:[#allocation2 + $0x20] sm:$0xff]  ;;  %v3079_v42 = vpack.c.bf16 %v236_v40, %v235_v39  ;;  %v238_v45 = vld [vmem:[%s3528_s6 + $0x28] sm:$0xff] }
  0x3e   :  { %vm351_vm2 = vcmp.gt.s32.totalorder %v3057_v27, 0  ;;  %v233_v34 = vld [vmem:[%s3528_s6] sm:$0xff]  ;;  %v87_v46 = vld [vmem:[#allocation2 + $0x30] sm:$0xff]  ;;  %v88_v49 = vld [vmem:[#allocation2 + $0x38] sm:$0xff]  ;;  %vm460_vm6 = vcmp.gt.s32.totalorder %v3057_v27, 1  ;;  %vm677_vm8 = vcmp.gt.s32.totalorder %v3057_v27, 2 }
  0x3f   :  { %2241 = vmatmul.mubr.msk.f32.vlgmr.msra.gmra.mrb[0].mxu0 %vm98_vm1, %v82_v12  ;;  %v352_v31 = vsel %vm351_vm2, 1, %v2898_v26  ;;  %v3068_v37 = vpack.c.bf16 %v234_v35, %v233_v34  ;;  %v86_v43 = vld [vmem:[#allocation2 + $0x28] sm:$0xff]  ;;  %v239_v50 = vld [vmem:[%s3528_s6 + $0x30] sm:$0xff]  ;;  %v240_v51 = vld [vmem:[%s3528_s6 + $0x38] sm:$0xff]  ;;  %v461_v12 = vsel %vm460_vm6, 1, %v2898_v26  ;;  %vm887_vm10 = vcmp.gt.s32.totalorder %v3057_v27, 3 }
  0x40   :  { %2512 = vmatpush3.bf16.msra.mxu1 %v3026_v13  ;;  %2243 = vmatprep.mubr.msk.f32.mxu0 %vm98_vm1, %v83_v36  ;;  %v237_v44 = vld [vmem:[%s3528_s6 + $0x20] sm:$0xff]  ;;  %v3104_v52 = vpack.c.bf16 %v240_v51, %v239_v50  ;;  %vm1097_vm12 = vcmp.gt.s32.totalorder %v3057_v27, 4  ;;  %vm1307_vm14 = vcmp.gt.s32.totalorder %v3057_v27, 5  ;;  %vm1517_vm2 = vcmp.gt.s32.totalorder %v3057_v27, 6 }
  0x41   :  { %2513 = vmatprep.subr.bf16.mxu1 %v2894_v0  ;;  %2521 = vmatpush3.bf16.msra.mxu0 %v3068_v37  ;;  %v3091_v48 = vpack.c.bf16 %v238_v45, %v237_v44 }
  0x42   :  { %2522 = vmatprep.subr.bf16.mxu0 %v2894_v0 }
  0x43   :  { %2261 = vmatmul.mubr.f32.vlgmr.msra.gmra.mrb[0].mxu1 %v2896_v1  ;;  %2244 = vmatmul.mubr.msk.f32.gmra.mrb[2].mxu0 %vm98_vm1, %v84_v38 }
  0x44   :  { %2515 = vmatpush3.bf16.msra.mxu1 %v3018_v8  ;;  %2271 = vmatprep.mubr.msk.f32.mxu1 %vm2895_vm0, %v2896_v1 }
  0x45   :  { %2516 = vmatprep.subr.bf16.mxu1 %v2894_v0  ;;  %2246 = vmatprep.mubr.msk.f32.mxu0 %vm98_vm1, %v85_v41 }
  0x46   :  { %2524 = vmatpush3.bf16.msra.mxu0 %v3079_v42 }
  0x47   :  { %2247 = vmatmul.mubr.msk.f32.gmra.mrb[4].mxu0 %vm98_vm1, %v86_v43  ;;  %2525 = vmatprep.subr.bf16.mxu0 %v2894_v0 }
  0x48   :  { %2518 = vmatpush3.bf16.msra.mxu1 %v3026_v13  ;;  %2249 = vmatprep.mubr.msk.f32.mxu0 %vm98_vm1, %v87_v46 }
  0x49   :  { %2531 = vmatprep.subr.bf16.mxu1 %v2894_v0 }
  0x4a   :  { %2527 = vmatpush3.bf16.msra.mxu0 %v3091_v48 }
  0x4b   :  { %2250 = vmatmul.mubr.msk.f32.gmra.mrb[6].mxu0 %vm98_vm1, %v88_v49  ;;  %2528 = vmatprep.subr.bf16.mxu0 %v2894_v0 }
  0x4c   :  { %2290 = vmatprep.mubr.msk.f32.mxu0 %vm2895_vm0, %v2896_v1 }
  0x4e   :  { %2530 = vmatpush3.bf16.msra.mxu0 %v3104_v52 }
  0x4f   :  { %2537 = vmatprep.subr.bf16.mxu0 %v2894_v0 }
  0xad   :  { %v3042_v16 = vpop.permute.xlu0 %328 }
 0x112   :  { %v3040_v14 = vpop.f32.mrb[0].mxu0 }
 0x113   :  { %v189_v15 = vpop.f32.mrb[1].mxu0 }
 0x114   :  { %v190_v21 = vadd.f32 %v3049_v20, %v189_v15  ;;  %v3158_v15 = vld [vmem:[%s3529_s7] ss:$0 sm:$0xff] }
 0x116   :  { %v312_v17 = vpop.f32.mrb[0].mxu1  ;;  %v3120_v60 = vpop.f32.mrb[2].mxu0 }
 0x117   :  { %v331_v18 = vadd.f32 %v3042_v16, %v312_v17  ;;  %v2262_v19 = vpop.f32.mrb[1].mxu1  ;;  %v316_v22 = vadd.f32 %v312_v17, %v190_v21  ;;  %v3122_v61 = vpop.f32.mrb[3].mxu0 }
 0x119   :  { %333 = vrot.lane.b32.xlu0 %v331_v18, %s2897_s19  ;;  %v2074_v23 = vmul.f32 -1.442695, %v316_v22  ;;  %v195_v18 = vadd.f32 %v3040_v14, %v3049_v20 }
 0x11a   :  { %v3124_v62 = vpop.f32.mrb[4].mxu0 }
 0x11b   :  { %2673 = vpow2.f32 %v2074_v23  ;;  %v3126_v63 = vpop.f32.mrb[5].mxu0 }
 0x11e   :  { %v3128_v2 = vpop.f32.mrb[6].mxu0 }
 0x11f   :  { %v3130_v3 = vpop.f32.mrb[7].mxu0 }
 0x125   :  { %v2674_v24 = vpop.eup %2673 }
 0x126   :  { %v320_v25 = vadd.f32 1.0, %v2674_v24 }
 0x128   :  { %2675 = vrcp.f32 %v320_v25 }
 0x132   :  { %v2676_v28 = vpop.eup %2675 }
 0x133   :  { %v343_v53 = vsub.f32 1.0, %v2676_v28  ;;  %v349_v56 = vmul.f32 0.0, %v2676_v28 }
 0x18b   :  { %v334_v29 = vpop.permute.xlu0 %333 }
 0x18c   :  { %v336_v30 = vmul.f32 %v2676_v28, %v334_v29 }
 0x18e   :  { %338 = vrot.lane.b32.xlu1 %v336_v30, %s2897_s19 }
 0x192   :  { %354 = vperm.xlu1 %2671, %v352_v31  }
 0x200   :  { %v339_v32 = vpop.permute.xlu1 %338 }
 0x201   :  { %v341_v33 = vadd.f32 %v339_v32, %v190_v21 }
 0x203   :  { %2677 = vtanh.f32 %v341_v33 }
 0x20d   :  { %v2678_v47 = vpop.eup %2677 }
 0x20e   :  { %345 = vrot.lane.b32.xlu0 %v2678_v47, %s2899_s1 }
 0x211   :  { %v3111_v54 = vpop.permute.xlu1 %354 }
 0x212   :  { %vm356_vm3 = vcmp.eq.s32.totalorder %v3111_v54, 1 }
 0x280   :  { %v346_v55 = vpop.permute.xlu0 %345 }
 0x281   :  { %v348_v57 = vmul.f32 %v346_v55, %v343_v53 }
 0x283   :  { %v350_v58 = vadd.f32 %v349_v56, %v348_v57  ;;  %v200_v56 = vadd.f32 %v3049_v20, %v3122_v61 }
 0x285   :  { %v3116_v59 = vsel %vm356_vm3, %v350_v58, 0.0 }
 0x286   :  { %359 = vrot.lane.b32.xlu1 %v3116_v59, %s2899_s1 }
 0x2f8   :  { %v360_v4 = vpop.permute.xlu1 %359 }
 0x2f9   :  { %v468_v5 = vsel %vm242_vm4, %v360_v4, 0.0  ;;  %2272 = vmatmul.mubr.msk.f32.vlgmr.msra.gmra.mrb[2].mxu1 %vm242_vm4, %v360_v4 }
 0x2fa   :  { %2291 = vmatmul.mubr.msk.f32.vlgmr.msra.gmra.mrb[8].mxu0 %vm475_vm5, %v468_v5  ;;  %2533 = vmatpush3.bf16.msra.mxu1 %v3018_v8 }
 0x2fb   :  { %2534 = vmatprep.subr.bf16.mxu1 %v2894_v0  ;;  %2301 = vmatprep.mubr.msk.f32.mxu1 %vm2895_vm0, %v2896_v1 }
 0x2fc   :  { %2539 = vmatpush3.bf16.msra.mxu0 %v3068_v37  ;;  %2320 = vmatprep.mubr.msk.f32.mxu0 %vm2895_vm0, %v2896_v1 }
 0x2fd   :  { %2540 = vmatprep.subr.bf16.mxu0 %v2894_v0 }
 0x2fe   :  { %2536 = vmatpush3.bf16.msra.mxu1 %v3026_v13 }
 0x2ff   :  { %2549 = vmatprep.subr.bf16.mxu1 %v2894_v0 }
 0x300   :  { %2542 = vmatpush3.bf16.msra.mxu0 %v3079_v42 }
 0x301   :  { %2543 = vmatprep.subr.bf16.mxu0 %v2894_v0 }
 0x304   :  { %2545 = vmatpush3.bf16.msra.mxu0 %v3091_v48 }
 0x305   :  { %2546 = vmatprep.subr.bf16.mxu0 %v2894_v0 }
 0x308   :  { %2548 = vmatpush3.bf16.msra.mxu0 %v3104_v52 }
 0x309   :  { %2567 = vmatprep.subr.bf16.mxu0 %v2894_v0 }
 0x3cc   :  { %v429_v6 = vpop.f32.mrb[2].mxu1 }
 0x3cd   :  { %v440_v7 = vadd.f32 %v429_v6, %v3042_v16  ;;  %v2273_v9 = vpop.f32.mrb[3].mxu1  ;;  %v545_v10 = vpop.f32.mrb[8].mxu0  ;;  %v433_v19 = vadd.f32 %v429_v6, %v195_v18 }
 0x3ce   :  { %v2292_v11 = vpop.f32.mrb[9].mxu0  ;;  %v546_v17 = vadd.f32 %v3158_v15, %v545_v10 }
 0x3cf   :  { %442 = vrot.lane.b32.xlu0 %v440_v7, %s2897_s19  ;;  %v2077_v21 = vmul.f32 -1.442695, %v433_v19  ;;  %v678_v11 = vsel %vm677_vm8, 1, %v2898_v26 }
 0x3d0   :  { %v2080_v32 = vmul.f32 -1.442695, %v546_v17 }
 0x3d1   :  { %2679 = vpow2.f32 %v2077_v21 }
 0x3d3   :  { %463 = vperm.xlu0 %2672, %v461_v12  }
 0x3d7   :  { %556 = vrot.lane.b32.xlu0 %v546_v17, %s2900_s22 }
 0x3db   :  { %v2680_v22 = vpop.eup %2679 }
 0x3dc   :  { %v437_v23 = vadd.f32 1.0, %v2680_v22 }
 0x3de   :  { %2681 = vrcp.f32 %v437_v23 }
 0x3e8   :  { %v2682_v24 = vpop.eup %2681 }
 0x3e9   :  { %v452_v35 = vsub.f32 1.0, %v2682_v24  ;;  %v458_v38 = vmul.f32 %v2682_v24, %v3116_v59 }
 0x441   :  { %v443_v25 = vpop.permute.xlu0 %442 }
 0x442   :  { %v445_v28 = vmul.f32 %v2682_v24, %v443_v25 }
 0x444   :  { %447 = vrot.lane.b32.xlu1 %v445_v28, %s2897_s19 }
 0x452   :  { %v3166_v34 = vpop.permute.xlu0 %463 }
 0x453   :  { %vm465_vm7 = vcmp.eq.s32.totalorder %v3166_v34, 1  ;;  %v205_v34 = vadd.f32 %v3120_v60, %v3049_v20 }
 0x456   :  { %v557_v41 = vpop.permute.xlu0 %556 }
 0x4b6   :  { %v448_v29 = vpop.permute.xlu1 %447 }
 0x4b7   :  { %v450_v30 = vadd.f32 %v448_v29, %v195_v18 }
 0x4b9   :  { %2683 = vtanh.f32 %v450_v30 }
 0x4ba   :  { %2685 = vpow2.f32 %v2080_v32 }
 0x4c3   :  { %v2684_v31 = vpop.eup %2683 }
 0x4c4   :  { %454 = vrot.lane.b32.xlu1 %v2684_v31, %s2899_s1  ;;  %v2686_v14 = vpop.eup %2685 }
 0x4c5   :  { %v552_v33 = vadd.f32 1.0, %v2686_v14 }
 0x4c7   :  { %2687 = vrcp.f32 %v552_v33 }
 0x4d1   :  { %v2688_v44 = vpop.eup %2687 }
 0x4d2   :  { %v559_v45 = vmul.f32 %v2688_v44, %v557_v41  ;;  %v566_v9 = vsub.f32 1.0, %v2688_v44  ;;  %v572_v12 = vmul.f32 0.0, %v2688_v44 }
 0x536   :  { %v455_v36 = vpop.permute.xlu1 %454 }
 0x537   :  { %v457_v39 = vmul.f32 %v455_v36, %v452_v35 }
 0x539   :  { %v459_v40 = vadd.f32 %v458_v38, %v457_v39 }
 0x53b   :  { %v3173_v43 = vsel %vm465_vm7, %v459_v40, %v3116_v59 }
 0x53c   :  { %576 = vrot.lane.b32.xlu1 %v3173_v43, %s2899_s1 }
 0x540   :  { %561 = vrot.lane.b32.xlu1 %v559_v45, %s2897_s19 }
 0x5ae   :  { %v577_v46 = vpop.permute.xlu1 %576 }
 0x5af   :  { %2302 = vmatmul.mubr.msk.f32.vlgmr.msra.gmra.mrb[4].mxu1 %vm242_vm4, %v577_v46 }
 0x5b0   :  { %2551 = vmatpush3.bf16.msra.mxu1 %v3018_v8  ;;  %2331 = vmatprep.mubr.msk.f32.mxu1 %vm2895_vm0, %v2896_v1 }
 0x5b1   :  { %2552 = vmatprep.subr.bf16.mxu1 %v2894_v0 }
 0x5b2   :  { %v562_v47 = vpop.permute.xlu1 %561 }
 0x5b3   :  { %v564_v49 = vadd.f32 %v562_v47, %v546_v17  ;;  %v888_v47 = vsel %vm887_vm10, 1, %v2898_v26 }
 0x5b4   :  { %2554 = vmatpush3.bf16.msra.mxu1 %v3026_v13 }
 0x5b5   :  { %2555 = vmatprep.subr.bf16.mxu1 %v2894_v0  ;;  %2689 = vtanh.f32 %v564_v49 }
 0x5bf   :  { %v2690_v55 = vpop.eup %2689 }
 0x682   :  { %v646_v50 = vpop.f32.mrb[4].mxu1 }
 0x683   :  { %v657_v51 = vadd.f32 %v646_v50, %v3042_v16  ;;  %v2303_v53 = vpop.f32.mrb[5].mxu1  ;;  %v650_v57 = vadd.f32 %v646_v50, %v200_v56 }
 0x685   :  { %659 = vrot.lane.b32.xlu0 %v657_v51, %s2897_s19  ;;  %v2082_v58 = vmul.f32 -1.442695, %v650_v57 }
 0x687   :  { %2691 = vpow2.f32 %v2082_v58 }
 0x689   :  { %568 = vrot.lane.b32.xlu0 %v2690_v55, %s2899_s1 }
 0x691   :  { %v2692_v59 = vpop.eup %2691 }
 0x692   :  { %v654_v4 = vadd.f32 1.0, %v2692_v59 }
 0x694   :  { %2693 = vrcp.f32 %v654_v4 }
 0x69e   :  { %v2694_v5 = vpop.eup %2693 }
 0x69f   :  { %v669_v28 = vsub.f32 1.0, %v2694_v5  ;;  %v675_v31 = vmul.f32 %v2694_v5, %v3173_v43 }
 0x6f7   :  { %v660_v6 = vpop.permute.xlu0 %659 }
 0x6f8   :  { %v662_v7 = vmul.f32 %v2694_v5, %v660_v6 }
 0x6fa   :  { %664 = vrot.lane.b32.xlu1 %v662_v7, %s2897_s19 }
 0x6fb   :  { %v569_v10 = vpop.permute.xlu0 %568 }
 0x6fc   :  { %v571_v17 = vmul.f32 %v569_v10, %v566_v9 }
 0x6fe   :  { %v573_v61 = vadd.f32 %v572_v12, %v571_v17  ;;  %680 = vperm.xlu1 %2671, %v678_v11  }
 0x700   :  { %v3195_v18 = vsel %vm356_vm3, %v573_v61, 0.0 }
 0x701   :  { %v685_v19 = vsel %vm242_vm4, %v577_v46, %v3195_v18 }
 0x702   :  { %2321 = vmatmul.mubr.msk.f32.vlgmr.msra.gmra.mrb[10].mxu0 %vm475_vm5, %v685_v19 }
 0x703   :  { %2569 = vmatpush3.bf16.msra.mxu0 %v3018_v8  ;;  %2361 = vmatprep.mubr.msk.f32.mxu0 %vm2895_vm0, %v2896_v1 }
 0x704   :  { %2570 = vmatprep.subr.bf16.mxu0 %v2894_v0 }
 0x707   :  { %2572 = vmatpush3.bf16.msra.mxu0 %v3026_v13 }
 0x708   :  { %2573 = vmatprep.subr.bf16.mxu0 %v2894_v0 }
 0x76c   :  { %v665_v21 = vpop.permute.xlu1 %664 }
 0x76d   :  { %v667_v54 = vadd.f32 %v665_v21, %v200_v56 }
 0x76f   :  { %2695 = vtanh.f32 %v667_v54 }
 0x779   :  { %v2696_v22 = vpop.eup %2695 }
 0x77a   :  { %671 = vrot.lane.b32.xlu0 %v2696_v22, %s2899_s1 }
 0x77d   :  { %v3209_v30 = vpop.permute.xlu1 %680 }
 0x77e   :  { %vm682_vm9 = vcmp.eq.s32.totalorder %v3209_v30, 1 }
 0x7d5   :  { %v755_v23 = vpop.f32.mrb[10].mxu0 }
 0x7d6   :  { %v756_v24 = vadd.f32 %v3158_v15, %v755_v23  ;;  %v2322_v25 = vpop.f32.mrb[11].mxu0 }
 0x7d8   :  { %766 = vrot.lane.b32.xlu0 %v756_v24, %s2900_s22  ;;  %v2084_v35 = vmul.f32 -1.442695, %v756_v24 }
 0x7da   :  { %2697 = vpow2.f32 %v2084_v35 }
 0x7e4   :  { %v2698_v36 = vpop.eup %2697 }
 0x7e5   :  { %v762_v38 = vadd.f32 1.0, %v2698_v36 }
 0x7e7   :  { %2699 = vrcp.f32 %v762_v38 }
 0x7ec   :  { %v672_v29 = vpop.permute.xlu0 %671 }
 0x7ed   :  { %v674_v32 = vmul.f32 %v672_v29, %v669_v28 }
 0x7ef   :  { %v676_v14 = vadd.f32 %v675_v31, %v674_v32 }
 0x7f1   :  { %v3216_v33 = vsel %vm682_vm9, %v676_v14, %v3173_v43  ;;  %v2700_v39 = vpop.eup %2699 }
 0x7f2   :  { %786 = vrot.lane.b32.xlu1 %v3216_v33, %s2899_s1  ;;  %v776_v53 = vsub.f32 1.0, %v2700_v39  ;;  %v782_v56 = vmul.f32 %v2700_v39, %v3195_v18 }
 0x84a   :  { %v767_v40 = vpop.permute.xlu0 %766 }
 0x84b   :  { %v769_v41 = vmul.f32 %v2700_v39, %v767_v40 }
 0x84d   :  { %771 = vrot.lane.b32.xlu1 %v769_v41, %s2897_s19 }
 0x864   :  { %v787_v44 = vpop.permute.xlu1 %786 }
 0x865   :  { %2332 = vmatmul.mubr.msk.f32.vlgmr.msra.gmra.mrb[6].mxu1 %vm242_vm4, %v787_v44 }
 0x866   :  { %2557 = vmatpush3.bf16.msra.mxu1 %v3068_v37  ;;  %2350 = vmatprep.mubr.msk.f32.mxu1 %vm2895_vm0, %v2896_v1 }
 0x867   :  { %2558 = vmatprep.subr.bf16.mxu1 %v2894_v0 }
 0x86a   :  { %2560 = vmatpush3.bf16.msra.mxu1 %v3079_v42 }
 0x86b   :  { %2561 = vmatprep.subr.bf16.mxu1 %v2894_v0 }
 0x86e   :  { %2563 = vmatpush3.bf16.msra.mxu1 %v3091_v48 }
 0x86f   :  { %2564 = vmatprep.subr.bf16.mxu1 %v2894_v0 }
 0x872   :  { %2566 = vmatpush3.bf16.msra.mxu1 %v3104_v52 }
 0x873   :  { %2585 = vmatprep.subr.bf16.mxu1 %v2894_v0 }
 0x8bf   :  { %v772_v43 = vpop.permute.xlu1 %771 }
 0x8c0   :  { %v774_v45 = vadd.f32 %v772_v43, %v756_v24 }
 0x8c2   :  { %2701 = vtanh.f32 %v774_v45 }
 0x8cc   :  { %v2702_v46 = vpop.eup %2701 }
 0x8cd   :  { %778 = vrot.lane.b32.xlu1 %v2702_v46, %s2899_s1 }
 0x8d1   :  { %890 = vperm.xlu1 %2671, %v888_v47  }
 0x938   :  { %v856_v49 = vpop.f32.mrb[6].mxu1 }
 0x939   :  { %v867_v50 = vadd.f32 %v856_v49, %v3042_v16  ;;  %v2333_v51 = vpop.f32.mrb[7].mxu1  ;;  %v860_v5 = vadd.f32 %v856_v49, %v205_v34 }
 0x93b   :  { %869 = vrot.lane.b32.xlu0 %v867_v50, %s2897_s19  ;;  %v2086_v6 = vmul.f32 -1.442695, %v860_v5 }
 0x93d   :  { %2703 = vpow2.f32 %v2086_v6 }
 0x93f   :  { %v779_v55 = vpop.permute.xlu1 %778 }
 0x940   :  { %v781_v57 = vmul.f32 %v779_v55, %v776_v53  ;;  %v1098_v55 = vsel %vm1097_vm12, 1, %v2898_v26 }
 0x942   :  { %v783_v58 = vadd.f32 %v782_v56, %v781_v57  ;;  %v210_v56 = vadd.f32 %v3049_v20, %v3126_v63 }
 0x944   :  { %v3241_v59 = vsel %vm465_vm7, %v783_v58, %v3195_v18 }
 0x945   :  { %v895_v4 = vsel %vm242_vm4, %v787_v44, %v3241_v59 }
 0x946   :  { %2351 = vmatmul.mubr.msk.f32.vlgmr.msra.gmra.mrb[8].mxu1 %vm475_vm5, %v895_v4 }
 0x947   :  { %2587 = vmatpush3.bf16.msra.mxu1 %v3018_v8  ;;  %2391 = vmatprep.mubr.msk.f32.mxu1 %vm2895_vm0, %v2896_v1  ;;  %v2704_v7 = vpop.eup %2703 }
 0x948   :  { %2588 = vmatprep.subr.bf16.mxu1 %v2894_v0  ;;  %v864_v9 = vadd.f32 1.0, %v2704_v7 }
 0x94a   :  { %2705 = vrcp.f32 %v864_v9 }
 0x94b   :  { %2590 = vmatpush3.bf16.msra.mxu1 %v3026_v13 }
 0x94c   :  { %2591 = vmatprep.subr.bf16.mxu1 %v2894_v0 }
 0x950   :  { %v3258_v28 = vpop.permute.xlu1 %890 }
 0x951   :  { %vm892_vm11 = vcmp.eq.s32.totalorder %v3258_v28, 1 }
 0x954   :  { %v2706_v10 = vpop.eup %2705 }
 0x955   :  { %v879_v24 = vsub.f32 1.0, %v2706_v10  ;;  %v885_v29 = vmul.f32 %v2706_v10, %v3216_v33 }
 0x9ad   :  { %v870_v11 = vpop.permute.xlu0 %869 }
 0x9ae   :  { %v872_v12 = vmul.f32 %v2706_v10, %v870_v11 }
 0x9b0   :  { %874 = vrot.lane.b32.xlu0 %v872_v12, %s2897_s19 }
 0xa19   :  { %v965_v17 = vpop.f32.mrb[8].mxu1 }
 0xa1a   :  { %v2352_v61 = vpop.f32.mrb[9].mxu1  ;;  %v966_v60 = vadd.f32 %v3158_v15, %v965_v17 }
 0xa1c   :  { %v2088_v54 = vmul.f32 -1.442695, %v966_v60 }
 0xa22   :  { %v875_v18 = vpop.permute.xlu0 %874 }
 0xa23   :  { %v877_v19 = vadd.f32 %v875_v18, %v205_v34 }
 0xa25   :  { %2707 = vtanh.f32 %v877_v19 }
 0xa26   :  { %2709 = vpow2.f32 %v2088_v54 }
 0xa2f   :  { %v2708_v21 = vpop.eup %2707 }
 0xa30   :  { %881 = vrot.lane.b32.xlu0 %v2708_v21, %s2899_s1  ;;  %v2710_v22 = vpop.eup %2709 }
 0xa31   :  { %v972_v23 = vadd.f32 1.0, %v2710_v22 }
 0xa33   :  { %2711 = vrcp.f32 %v972_v23 }
 0xa34   :  { %976 = vrot.lane.b32.xlu0 %v966_v60, %s2900_s22 }
 0xa3d   :  { %v2712_v36 = vpop.eup %2711 }
 0xa3e   :  { %v986_v44 = vsub.f32 1.0, %v2712_v36  ;;  %v992_v45 = vmul.f32 %v2712_v36, %v3241_v59 }
 0xaa2   :  { %v882_v25 = vpop.permute.xlu0 %881 }
 0xaa3   :  { %v884_v31 = vmul.f32 %v882_v25, %v879_v24 }
 0xaa5   :  { %v886_v32 = vadd.f32 %v885_v29, %v884_v31 }
 0xaa6   :  { %v977_v14 = vpop.permute.xlu0 %976 }
 0xaa7   :  { %v3265_v35 = vsel %vm892_vm11, %v886_v32, %v3216_v33  ;;  %v979_v38 = vmul.f32 %v2712_v36, %v977_v14 }
 0xaa8   :  { %996 = vrot.lane.b32.xlu1 %v3265_v35, %s2899_s1 }
 0xaac   :  { %981 = vrot.lane.b32.xlu1 %v979_v38, %s2897_s19 }
 0xb1a   :  { %v997_v39 = vpop.permute.xlu1 %996 }
 0xb1b   :  { %2362 = vmatmul.mubr.msk.f32.vlgmr.msra.gmra.mrb[12].mxu0 %vm242_vm4, %v997_v39 }
 0xb1c   :  { %2575 = vmatpush3.bf16.msra.mxu0 %v3068_v37  ;;  %2380 = vmatprep.mubr.msk.f32.mxu0 %vm2895_vm0, %v2896_v1 }
 0xb1d   :  { %2576 = vmatprep.subr.bf16.mxu0 %v2894_v0 }
 0xb1e   :  { %v982_v40 = vpop.permute.xlu1 %981 }
 0xb1f   :  { %v984_v33 = vadd.f32 %v982_v40, %v966_v60 }
 0xb20   :  { %2578 = vmatpush3.bf16.msra.mxu0 %v3079_v42 }
 0xb21   :  { %2713 = vtanh.f32 %v984_v33  ;;  %2579 = vmatprep.subr.bf16.mxu0 %v2894_v0 }
 0xb24   :  { %2581 = vmatpush3.bf16.msra.mxu0 %v3091_v48 }
 0xb25   :  { %2582 = vmatprep.subr.bf16.mxu0 %v2894_v0 }
 0xb28   :  { %2584 = vmatpush3.bf16.msra.mxu0 %v3104_v52 }
 0xb29   :  { %2603 = vmatprep.subr.bf16.mxu0 %v2894_v0 }
 0xb2b   :  { %v2714_v41 = vpop.eup %2713 }
 0xb2c   :  { %988 = vrot.lane.b32.xlu0 %v2714_v41, %s2899_s1 }
 0xb9e   :  { %v989_v43 = vpop.permute.xlu0 %988 }
 0xb9f   :  { %v991_v46 = vmul.f32 %v989_v43, %v986_v44 }
 0xba1   :  { %v993_v47 = vadd.f32 %v992_v45, %v991_v46 }
 0xba3   :  { %v3286_v49 = vsel %vm682_vm9, %v993_v47, %v3241_v59  ;;  %v1308_v47 = vsel %vm1307_vm14, 1, %v2898_v26 }
 0xba4   :  { %v1105_v50 = vsel %vm242_vm4, %v997_v39, %v3286_v49 }
 0xba5   :  { %2381 = vmatmul.mubr.msk.f32.vlgmr.msra.gmra.mrb[14].mxu0 %vm475_vm5, %v1105_v50 }
 0xba6   :  { %2605 = vmatpush3.bf16.msra.mxu0 %v3018_v8  ;;  %2421 = vmatprep.mubr.msk.f32.mxu0 %vm2895_vm0, %v2896_v1 }
 0xba7   :  { %2606 = vmatprep.subr.bf16.mxu0 %v2894_v0 }
 0xbaa   :  { %2608 = vmatpush3.bf16.msra.mxu0 %v3026_v13 }
 0xbab   :  { %2609 = vmatprep.subr.bf16.mxu0 %v2894_v0 }
 0xbee   :  { %v1066_v51 = vpop.f32.mrb[12].mxu0 }
 0xbef   :  { %v1077_v30 = vadd.f32 %v1066_v51, %v3042_v16  ;;  %v2363_v53 = vpop.f32.mrb[13].mxu0  ;;  %v1070_v57 = vadd.f32 %v1066_v51, %v210_v56 }
 0xbf1   :  { %1079 = vrot.lane.b32.xlu1 %v1077_v30, %s2897_s19  ;;  %v2090_v58 = vmul.f32 -1.442695, %v1070_v57 }
 0xbf3   :  { %2715 = vpow2.f32 %v2090_v58 }
 0xbf5   :  { %1100 = vperm.xlu1 %2671, %v1098_v55  }
 0xbfd   :  { %v2716_v59 = vpop.eup %2715 }
 0xbfe   :  { %v1074_v4 = vadd.f32 1.0, %v2716_v59 }
 0xc00   :  { %2717 = vrcp.f32 %v1074_v4 }
 0xc0a   :  { %v2718_v34 = vpop.eup %2717 }
 0xc0b   :  { %v1089_v19 = vsub.f32 1.0, %v2718_v34  ;;  %v1095_v54 = vmul.f32 %v2718_v34, %v3265_v35 }
 0xc63   :  { %v1080_v5 = vpop.permute.xlu1 %1079 }
 0xc64   :  { %v1082_v6 = vmul.f32 %v2718_v34, %v1080_v5 }
 0xc66   :  { %1084 = vrot.lane.b32.xlu0 %v1082_v6, %s2897_s19 }
 0xc74   :  { %v3307_v60 = vpop.permute.xlu1 %1100 }
 0xc75   :  { %vm1102_vm13 = vcmp.eq.s32.totalorder %v3307_v60, 1 }
 0xc78   :  { %v1175_v7 = vpop.f32.mrb[14].mxu0 }
 0xc79   :  { %v2382_v9 = vpop.f32.mrb[15].mxu0  ;;  %v1176_v63 = vadd.f32 %v3158_v15, %v1175_v7 }
 0xc7b   :  { %v2092_v17 = vmul.f32 -1.442695, %v1176_v63 }
 0xcd8   :  { %v1085_v10 = vpop.permute.xlu0 %1084 }
 0xcd9   :  { %v1087_v11 = vadd.f32 %v1085_v10, %v210_v56 }
 0xcdb   :  { %2719 = vtanh.f32 %v1087_v11 }
 0xcdc   :  { %2721 = vpow2.f32 %v2092_v17 }
 0xce5   :  { %v2720_v12 = vpop.eup %2719 }
 0xce6   :  { %1091 = vrot.lane.b32.xlu0 %v2720_v12, %s2899_s1  ;;  %v2722_v61 = vpop.eup %2721 }
 0xce7   :  { %v1182_v18 = vadd.f32 1.0, %v2722_v61 }
 0xce9   :  { %2723 = vrcp.f32 %v1182_v18 }
 0xcea   :  { %1186 = vrot.lane.b32.xlu0 %v1176_v63, %s2900_s22 }
 0xcf3   :  { %v2724_v29 = vpop.eup %2723 }
 0xcf4   :  { %v1196_v38 = vsub.f32 1.0, %v2724_v29  ;;  %v1202_v40 = vmul.f32 %v2724_v29, %v3286_v49 }
 0xd58   :  { %v1092_v21 = vpop.permute.xlu0 %1091 }
 0xd59   :  { %v1094_v22 = vmul.f32 %v1092_v21, %v1089_v19 }
 0xd5b   :  { %v1096_v23 = vadd.f32 %v1095_v54, %v1094_v22 }
 0xd5c   :  { %v1187_v24 = vpop.permute.xlu0 %1186 }
 0xd5d   :  { %v3314_v25 = vsel %vm1102_vm13, %v1096_v23, %v3265_v35  ;;  %v1189_v31 = vmul.f32 %v2724_v29, %v1187_v24 }
 0xd5e   :  { %1206 = vrot.lane.b32.xlu1 %v3314_v25, %s2899_s1 }
 0xd62   :  { %1191 = vrot.lane.b32.xlu1 %v1189_v31, %s2897_s19 }
 0xdd0   :  { %v1207_v32 = vpop.permute.xlu1 %1206 }
 0xdd1   :  { %2392 = vmatmul.mubr.msk.f32.vlgmr.msra.gmra.mrb[10].mxu1 %vm242_vm4, %v1207_v32 }
 0xdd2   :  { %2593 = vmatpush3.bf16.msra.mxu1 %v3068_v37  ;;  %2410 = vmatprep.mubr.msk.f32.mxu1 %vm2895_vm0, %v2896_v1 }
 0xdd3   :  { %2594 = vmatprep.subr.bf16.mxu1 %v2894_v0 }
 0xdd4   :  { %v1192_v14 = vpop.permute.xlu1 %1191 }
 0xdd5   :  { %v1194_v35 = vadd.f32 %v1192_v14, %v1176_v63 }
 0xdd6   :  { %2596 = vmatpush3.bf16.msra.mxu1 %v3079_v42 }
 0xdd7   :  { %2725 = vtanh.f32 %v1194_v35  ;;  %2597 = vmatprep.subr.bf16.mxu1 %v2894_v0 }
 0xdda   :  { %2599 = vmatpush3.bf16.msra.mxu1 %v3091_v48 }
 0xddb   :  { %2600 = vmatprep.subr.bf16.mxu1 %v2894_v0 }
 0xdde   :  { %2602 = vmatpush3.bf16.msra.mxu1 %v3104_v52 }
 0xddf   :  { %2621 = vmatprep.subr.bf16.mxu1 %v2894_v0 }
 0xde1   :  { %v2726_v36 = vpop.eup %2725 }
 0xde2   :  { %1198 = vrot.lane.b32.xlu0 %v2726_v36, %s2899_s1 }
 0xe54   :  { %v1199_v39 = vpop.permute.xlu0 %1198 }
 0xe55   :  { %v1201_v33 = vmul.f32 %v1199_v39, %v1196_v38 }
 0xe57   :  { %v1203_v41 = vadd.f32 %v1202_v40, %v1201_v33 }
 0xe59   :  { %v3335_v44 = vsel %vm892_vm11, %v1203_v41, %v3286_v49  ;;  %v220_v41 = vadd.f32 %v3049_v20, %v3130_v3 }
 0xe5a   :  { %v1315_v43 = vsel %vm242_vm4, %v1207_v32, %v3335_v44 }
 0xe5b   :  { %2411 = vmatmul.mubr.msk.f32.vlgmr.msra.gmra.mrb[12].mxu1 %vm475_vm5, %v1315_v43 }
 0xe5c   :  { %2623 = vmatpush3.bf16.msra.mxu1 %v3018_v8  ;;  %2451 = vmatprep.mubr.msk.f32.mxu1 %vm2895_vm0, %v2896_v1  ;;  %v215_v8 = vadd.f32 %v3124_v62, %v3049_v20 }
 0xe5d   :  { %2624 = vmatprep.subr.bf16.mxu1 %v2894_v0 }
 0xe60   :  { %2626 = vmatpush3.bf16.msra.mxu1 %v3026_v13 }
 0xe61   :  { %2627 = vmatprep.subr.bf16.mxu1 %v2894_v0 }
 0xea4   :  { %v1276_v45 = vpop.f32.mrb[10].mxu1 }
 0xea5   :  { %v1287_v28 = vadd.f32 %v1276_v45, %v3042_v16  ;;  %v2393_v46 = vpop.f32.mrb[11].mxu1  ;;  %v1280_v49 = vadd.f32 %v1276_v45, %v215_v8 }
 0xea7   :  { %1289 = vrot.lane.b32.xlu1 %v1287_v28, %s2897_s19  ;;  %v2094_v50 = vmul.f32 -1.442695, %v1280_v49 }
 0xea9   :  { %2727 = vpow2.f32 %v2094_v50  ;;  %v1518_v50 = vsel %vm1517_vm2, 1, %v2898_v26 }
 0xeab   :  { %1310 = vperm.xlu1 %2671, %v1308_v47  }
 0xeb3   :  { %v2728_v13 = vpop.eup %2727 }
 0xeb4   :  { %v1284_v51 = vadd.f32 1.0, %v2728_v13 }
 0xeb6   :  { %2729 = vrcp.f32 %v1284_v51 }
 0xec0   :  { %v2730_v30 = vpop.eup %2729 }
 0xec1   :  { %v1299_v12 = vsub.f32 1.0, %v2730_v30  ;;  %v1305_v17 = vmul.f32 %v2730_v30, %v3314_v25 }
 0xf19   :  { %v1290_v53 = vpop.permute.xlu1 %1289 }
 0xf1a   :  { %v1292_v55 = vmul.f32 %v2730_v30, %v1290_v53 }
 0xf1c   :  { %1294 = vrot.lane.b32.xlu0 %v1292_v55, %s2897_s19 }
 0xf2a   :  { %v3356_v7 = vpop.permute.xlu1 %1310 }
 0xf2b   :  { %vm1312_vm15 = vcmp.eq.s32.totalorder %v3356_v7, 1 }
 0xf2e   :  { %v1385_v56 = vpop.f32.mrb[12].mxu1 }
 0xf2f   :  { %v1386_v57 = vadd.f32 %v3158_v15, %v1385_v56  ;;  %v2412_v58 = vpop.f32.mrb[13].mxu1 }
 0xf31   :  { %1396 = vrot.lane.b32.xlu1 %v1386_v57, %s2900_s22  ;;  %v2096_v59 = vmul.f32 -1.442695, %v1386_v57 }
 0xf33   :  { %2731 = vpow2.f32 %v2096_v59 }
 0xf3d   :  { %v2732_v34 = vpop.eup %2731 }
 0xf3e   :  { %v1392_v5 = vadd.f32 1.0, %v2732_v34 }
 0xf8e   :  { %v1295_v62 = vpop.permute.xlu0 %1294 }
 0xf8f   :  { %v1297_v4 = vadd.f32 %v1295_v62, %v215_v8 }
 0xf91   :  { %2733 = vtanh.f32 %v1297_v4 }
 0xf92   :  { %2735 = vrcp.f32 %v1392_v5 }
 0xf9b   :  { %v2734_v6 = vpop.eup %2733 }
 0xf9c   :  { %1301 = vrot.lane.b32.xlu0 %v2734_v6, %s2899_s1  ;;  %v2736_v9 = vpop.eup %2735 }
 0xf9d   :  { %v1406_v24 = vsub.f32 1.0, %v2736_v9  ;;  %v1412_v29 = vmul.f32 %v2736_v9, %v3335_v44 }
 0xfa3   :  { %v1397_v10 = vpop.permute.xlu1 %1396 }
 0xfa4   :  { %v1399_v11 = vmul.f32 %v2736_v9, %v1397_v10 }
 0xfa6   :  { %1401 = vrot.lane.b32.xlu1 %v1399_v11, %s2897_s19 }
0x100e   :  { %v1302_v63 = vpop.permute.xlu0 %1301 }
0x100f   :  { %v1304_v61 = vmul.f32 %v1302_v63, %v1299_v12 }
0x1011   :  { %v1306_v18 = vadd.f32 %v1305_v17, %v1304_v61 }
0x1013   :  { %v3364_v19 = vsel %vm1312_vm15, %v1306_v18, %v3314_v25 }
0x1014   :  { %1416 = vrot.lane.b32.xlu0 %v3364_v19, %s2899_s1 }
0x1018   :  { %v1402_v21 = vpop.permute.xlu1 %1401 }
0x1019   :  { %v1404_v54 = vadd.f32 %v1402_v21, %v1386_v57 }
0x101b   :  { %2737 = vtanh.f32 %v1404_v54  ;;  %v2769_v54 = vld [vmem:[%s3526_s4] ss:$0 sm:$0xff] }
0x1025   :  { %v2738_v22 = vpop.eup %2737 }
0x1026   :  { %1408 = vrot.lane.b32.xlu0 %v2738_v22, %s2899_s1  ;;  %v225_v22 = vadd.f32 %v2769_v54, %v3128_v2 }
0x1086   :  { %v1417_v23 = vpop.permute.xlu0 %1416 }
0x1087   :  { %2422 = vmatmul.mubr.msk.f32.vlgmr.msra.gmra.mrb[16].mxu0 %vm242_vm4, %v1417_v23 }
0x1088   :  { %2611 = vmatpush3.bf16.msra.mxu0 %v3068_v37  ;;  %2440 = vmatprep.mubr.msk.f32.mxu0 %vm2895_vm0, %v2896_v1 }
0x1089   :  { %2612 = vmatprep.subr.bf16.mxu0 %v2894_v0 }
0x108c   :  { %2614 = vmatpush3.bf16.msra.mxu0 %v3079_v42 }
0x108d   :  { %2615 = vmatprep.subr.bf16.mxu0 %v2894_v0 }
0x1090   :  { %2617 = vmatpush3.bf16.msra.mxu0 %v3091_v48 }
0x1091   :  { %2618 = vmatprep.subr.bf16.mxu0 %v2894_v0 }
0x1094   :  { %2620 = vmatpush3.bf16.msra.mxu0 %v3104_v52 }
0x1095   :  { %2639 = vmatprep.subr.bf16.mxu0 %v2894_v0 }
0x1098   :  { %v1409_v25 = vpop.permute.xlu0 %1408 }
0x1099   :  { %v1411_v31 = vmul.f32 %v1409_v25, %v1406_v24 }
0x109b   :  { %v1413_v32 = vadd.f32 %v1412_v29, %v1411_v31 }
0x109d   :  { %v3384_v14 = vsel %vm1102_vm13, %v1413_v32, %v3335_v44 }
0x109e   :  { %v1525_v35 = vsel %vm242_vm4, %v1417_v23, %v3384_v14 }
0x109f   :  { %2441 = vmatmul.mubr.msk.f32.vlgmr.msra.gmra.mrb[18].mxu0 %vm475_vm5, %v1525_v35  ;;  %v2770_v35 = vld [vmem:[%s3522_s0] sm:$0xff] }
0x10a0   :  { %2641 = vmatpush3.bf16.msra.mxu0 %v3068_v37  ;;  %2489 = vmatprep.mubr.msk.f32.mxu0 %vm2895_vm0, %v2896_v1 }
0x10a1   :  { %2642 = vmatprep.subr.bf16.mxu0 %v2894_v0 }
0x10a4   :  { %2644 = vmatpush3.bf16.msra.mxu0 %v3079_v42 }
0x10a5   :  { %2645 = vmatprep.subr.bf16.mxu0 %v2894_v0 }
0x10a8   :  { %2647 = vmatpush3.bf16.msra.mxu0 %v3091_v48 }
0x10a9   :  { %2648 = vmatprep.subr.bf16.mxu0 %v2894_v0 }
0x10ac   :  { %2650 = vmatpush3.bf16.msra.mxu0 %v3104_v52 }
0x115a   :  { %v1486_v60 = vpop.f32.mrb[16].mxu0 }
0x115b   :  { %v1497_v36 = vadd.f32 %v1486_v60, %v3042_v16  ;;  %v2423_v38 = vpop.f32.mrb[17].mxu0  ;;  %v1490_v44 = vadd.f32 %v1486_v60, %v220_v41 }
0x115d   :  { %1499 = vrot.lane.b32.xlu1 %v1497_v36, %s2897_s19  ;;  %v2098_v43 = vmul.f32 -1.442695, %v1490_v44 }
0x115f   :  { %2739 = vpow2.f32 %v2098_v43 }
0x1169   :  { %v2740_v45 = vpop.eup %2739 }
0x116a   :  { %v1494_v28 = vadd.f32 1.0, %v2740_v45 }
0x116c   :  { %2741 = vrcp.f32 %v1494_v28 }
0x1172   :  { %v1595_v39 = vpop.f32.mrb[18].mxu0 }
0x1173   :  { %v1596_v40 = vadd.f32 %v3158_v15, %v1595_v39  ;;  %v2442_v33 = vpop.f32.mrb[19].mxu0 }
0x1175   :  { %1606 = vrot.lane.b32.xlu1 %v1596_v40, %s2900_s22  ;;  %v2100_v46 = vmul.f32 -1.442695, %v1596_v40 }
0x1176   :  { %v2742_v47 = vpop.eup %2741 }
0x1177   :  { %2743 = vpow2.f32 %v2100_v46  ;;  %v1509_v62 = vsub.f32 1.0, %v2742_v47  ;;  %v1515_v34 = vmul.f32 %v2742_v47, %v3364_v19 }
0x1181   :  { %v2744_v13 = vpop.eup %2743 }
0x1182   :  { %v1602_v20 = vadd.f32 1.0, %v2744_v13 }
0x1184   :  { %2745 = vrcp.f32 %v1602_v20 }
0x118e   :  { %v2746_v3 = vpop.eup %2745 }
0x118f   :  { %v1616_v12 = vsub.f32 1.0, %v2746_v3  ;;  %v1622_v17 = vmul.f32 %v2746_v3, %v3384_v14 }
0x11cf   :  { %v1500_v8 = vpop.permute.xlu1 %1499 }
0x11d0   :  { %v1502_v49 = vmul.f32 %v2742_v47, %v1500_v8 }
0x11d2   :  { %1504 = vrot.lane.b32.xlu0 %v1502_v49, %s2897_s19 }
0x11d6   :  { %1520 = vperm.xlu0 %2672, %v1518_v50  }
0x11e7   :  { %v1607_v51 = vpop.permute.xlu1 %1606 }
0x11e8   :  { %v1609_v30 = vmul.f32 %v2746_v3, %v1607_v51 }
0x11ea   :  { %1611 = vrot.lane.b32.xlu0 %v1609_v30, %s2897_s19 }
0x1244   :  { %v1505_v53 = vpop.permute.xlu0 %1504 }
0x1245   :  { %v1507_v55 = vadd.f32 %v1505_v53, %v220_v41 }
0x1247   :  { %2747 = vtanh.f32 %v1507_v55 }
0x1251   :  { %v2748_v56 = vpop.eup %2747 }
0x1252   :  { %1511 = vrot.lane.b32.xlu1 %v2748_v56, %s2899_s1 }
0x1255   :  { %v3409_v27 = vpop.permute.xlu0 %1520 }
0x1256   :  { %vm1522_vm3 = vcmp.eq.s32.totalorder %v3409_v27, 1 }
0x125c   :  { %v1612_v57 = vpop.permute.xlu0 %1611 }
0x125d   :  { %v1614_v58 = vadd.f32 %v1612_v57, %v1596_v40 }
0x125f   :  { %2749 = vtanh.f32 %v1614_v58 }
0x1269   :  { %v2750_v59 = vpop.eup %2749 }
0x126a   :  { %1618 = vrot.lane.b32.xlu0 %v2750_v59, %s2899_s1 }
0x12c4   :  { %v1512_v4 = vpop.permute.xlu1 %1511 }
0x12c5   :  { %v1514_v5 = vmul.f32 %v1512_v4, %v1509_v62 }
0x12c7   :  { %v1516_v6 = vadd.f32 %v1515_v34, %v1514_v5 }
0x12c9   :  { %v3417_v9 = vsel %vm1522_vm3, %v1516_v6, %v3364_v19 }
0x12ca   :  { %1626 = vrot.lane.b32.xlu1 %v3417_v9, %s2899_s1 }
0x12dc   :  { %v1619_v11 = vpop.permute.xlu0 %1618 }
0x12dd   :  { %v1621_v63 = vmul.f32 %v1619_v11, %v1616_v12  ;;  %v1947_v11 = vld [vmem:[%s3530_s8 + $0x8] sm:$0xff]  ;;  %v1948_v12 = vld [vmem:[%s3530_s8 + $0x10] sm:$0xff] }
0x12df   :  { %v1623_v61 = vadd.f32 %v1622_v17, %v1621_v63  ;;  %v1949_v17 = vld [vmem:[%s3530_s8 + $0x18] sm:$0xff] }
0x133c   :  { %v1627_v10 = vpop.permute.xlu1 %1626 }
0x133d   :  { %2452 = vmatmul.mubr.msk.f32.vlgmr.msra.gmra.mrb[14].mxu1 %vm242_vm4, %v1627_v10 }
0x133e   :  { %2629 = vmatpush3.bf16.msra.mxu1 %v3068_v37  ;;  %2470 = vmatprep.mubr.msk.f32.mxu1 %vm2895_vm0, %v2896_v1  ;;  %v3435_v37 = vsel %vm1312_vm15, %v1623_v61, %v3384_v14  ;;  %v2655_v61 = vpack.c.bf16 %v1949_v17, %v1948_v12 }
0x133f   :  { %2630 = vmatprep.subr.bf16.mxu1 %v2894_v0 }
0x1342   :  { %2632 = vmatpush3.bf16.msra.mxu1 %v3079_v42  ;;  %v1735_v42 = vsel %vm242_vm4, %v1627_v10, %v3435_v37 }
0x1343   :  { %2633 = vmatprep.subr.bf16.mxu1 %v2894_v0 }
0x1346   :  { %2635 = vmatpush3.bf16.msra.mxu1 %v3091_v48 }
0x1347   :  { %2636 = vmatprep.subr.bf16.mxu1 %v2894_v0 }
0x134a   :  { %2638 = vmatpush3.bf16.msra.mxu1 %v3104_v52 }
0x134b   :  { %2651 = vmatprep.subr.bf16.mxu1 %v2894_v0 }
0x134d   :  { %2471 = vmatmul.mubr.msk.f32.vlgmr.msra.gmra.mrb[16].mxu1 %vm475_vm5, %v1735_v42 }
0x134e   :  { %2500 = vmatprep.mubr.msk.f32.mxu1 %vm2895_vm0, %v2896_v1  ;;  %vm1727_vm0 = vcmp.gt.s32.totalorder %v2770_v35, 7 }
0x134f   :  { %v1728_v2 = vsel %vm1727_vm0, 1, %v2898_v26 }
0x1410   :  { %v1696_v48 = vpop.f32.mrb[14].mxu1 }
0x1411   :  { %v1707_v18 = vadd.f32 %v1696_v48, %v3042_v16  ;;  %v2453_v19 = vpop.f32.mrb[15].mxu1  ;;  %v1700_v23 = vadd.f32 %v1696_v48, %v225_v22 }
0x1413   :  { %1709 = vrot.lane.b32.xlu1 %v1707_v18, %s2897_s19  ;;  %v2102_v1 = vmul.f32 -1.442695, %v1700_v23 }
0x1415   :  { %2751 = vpow2.f32 %v2102_v1 }
0x141f   :  { %v2752_v24 = vpop.eup %2751 }
0x1420   :  { %v1805_v52 = vpop.f32.mrb[16].mxu1  ;;  %v1704_v25 = vadd.f32 1.0, %v2752_v24 }
0x1421   :  { %v1806_v7 = vadd.f32 %v3158_v15, %v1805_v52  ;;  %v2472_v21 = vpop.f32.mrb[17].mxu1 }
0x1423   :  { %1816 = vrot.lane.b32.xlu0 %v1806_v7, %s2900_s22  ;;  %v2104_v16 = vmul.f32 -1.442695, %v1806_v7 }
0x1425   :  { %2753 = vpow2.f32 %v2104_v16 }
0x1426   :  { %2755 = vrcp.f32 %v1704_v25 }
0x142f   :  { %v2754_v29 = vpop.eup %2753 }
0x1430   :  { %v2756_v31 = vpop.eup %2755  ;;  %v1812_v60 = vadd.f32 1.0, %v2754_v29 }
0x1431   :  { %v1719_v26 = vsub.f32 1.0, %v2756_v31  ;;  %v1725_v47 = vmul.f32 %v2756_v31, %v3417_v9 }
0x1432   :  { %2757 = vrcp.f32 %v1812_v60 }
0x143c   :  { %v2758_v36 = vpop.eup %2757 }
0x143d   :  { %v1826_v20 = vsub.f32 1.0, %v2758_v36  ;;  %v1832_v51 = vmul.f32 %v2758_v36, %v3435_v37 }
0x1485   :  { %v1710_v32 = vpop.permute.xlu1 %1709 }
0x1486   :  { %v1712_v14 = vmul.f32 %v2756_v31, %v1710_v32 }
0x1488   :  { %1714 = vrot.lane.b32.xlu1 %v1712_v14, %s2897_s19 }
0x148c   :  { %1730 = vperm.xlu1 %2671, %v1728_v2  }
0x1495   :  { %v1817_v38 = vpop.permute.xlu0 %1816 }
0x1496   :  { %v1819_v39 = vmul.f32 %v2758_v36, %v1817_v38 }
0x1498   :  { %1821 = vrot.lane.b32.xlu0 %v1819_v39, %s2897_s19 }
0x14fa   :  { %v1715_v40 = vpop.permute.xlu1 %1714 }
0x14fb   :  { %v1717_v33 = vadd.f32 %v1715_v40, %v225_v22 }
0x14fd   :  { %2759 = vtanh.f32 %v1717_v33 }
0x1507   :  { %v2760_v41 = vpop.eup %2759 }
0x1508   :  { %1721 = vrot.lane.b32.xlu0 %v2760_v41, %s2899_s1 }
0x150a   :  { %v1822_v44 = vpop.permute.xlu0 %1821 }
0x150b   :  { %v1824_v43 = vadd.f32 %v1822_v44, %v1806_v7  ;;  %v1731_v46 = vpop.permute.xlu1 %1730 }
0x150c   :  { %vm1732_vm6 = vcmp.eq.s32.totalorder %v1731_v46, 1 }
0x150d   :  { %2761 = vtanh.f32 %v1824_v43 }
0x1517   :  { %v2762_v45 = vpop.eup %2761 }
0x1518   :  { %1828 = vrot.lane.b32.xlu1 %v2762_v45, %s2899_s1 }
0x157a   :  { %v1722_v28 = vpop.permute.xlu0 %1721 }
0x157b   :  { %v1724_v8 = vmul.f32 %v1722_v28, %v1719_v26 }
0x157d   :  { %v1726_v49 = vadd.f32 %v1725_v47, %v1724_v8 }
0x157f   :  { %v1733_v50 = vsel %vm1732_vm6, %v1726_v49, %v3417_v9 }
0x1580   :  { %1836 = vrot.lane.b32.xlu0 %v1733_v50, %s2899_s1 }
0x158a   :  { %v1829_v13 = vpop.permute.xlu1 %1828 }
0x158b   :  { %v1831_v3 = vmul.f32 %v1829_v13, %v1826_v20 }
0x158d   :  { %v1833_v30 = vadd.f32 %v1832_v51, %v1831_v3 }
0x158f   :  { %v1834_v53 = vsel %vm1522_vm3, %v1833_v30, %v3435_v37 }
0x15f2   :  { %v1837_v55 = vpop.permute.xlu0 %1836 }
0x15f3   :  { %v1839_v56 = vsel %vm242_vm4, %v1837_v55, %v1834_v53  ;;  %1939 = vst.msk [vmem:[#allocation9] sm:$0xff] %vm242_vm4, %v1837_v55 }
0x15f4   :  { %2490 = vmatmul.mubr.msk.f32.vlgmr.msra.gmra.mrb[20].mxu0 %vm475_vm5, %v1839_v56 }
0x16c7   :  { %v1909_v57 = vpop.f32.mrb[20].mxu0 }
0x16c8   :  { %v1910_v58 = vadd.f32 %v3158_v15, %v1909_v57  ;;  %v2491_v59 = vpop.f32.mrb[21].mxu0  ;;  %v1946_v15 = vld [vmem:[%s3530_s8] sm:$0xff]  ;;  %s2901_s8 = smov [#allocation9]  }
0x16c9   :  { %v2652_v63 = vpack.c.bf16 %v1947_v11, %v1946_v15 }
0x16ca   :  { %1920 = vrot.lane.b32.xlu1 %v1910_v58, %s2900_s22  ;;  %v2106_v62 = vmul.f32 -1.442695, %v1910_v58 }
0x16cb   :  { %2653 = vmatpush3.bf16.msra.mxu1 %v2652_v63 }
0x16cc   :  { %2763 = vpow2.f32 %v2106_v62  ;;  %2654 = vmatprep.subr.bf16.mxu1 %v2894_v0 }
0x16cf   :  { %2656 = vmatpush3.bf16.msra.mxu1 %v2655_v61 }
0x16d6   :  { %v2764_v4 = vpop.eup %2763 }
0x16d7   :  { %v1916_v34 = vadd.f32 1.0, %v2764_v4 }
0x16d9   :  { %2765 = vrcp.f32 %v1916_v34 }
0x16e3   :  { %v2766_v27 = vpop.eup %2765 }
0x16e4   :  { %v1930_v42 = vsub.f32 1.0, %v2766_v27  ;;  %v1936_v18 = vmul.f32 %v2766_v27, %v1834_v53 }
0x173c   :  { %v1921_v5 = vpop.permute.xlu1 %1920 }
0x173d   :  { %v1923_v6 = vmul.f32 %v2766_v27, %v1921_v5 }
0x173f   :  { %1925 = vrot.lane.b32.xlu0 %v1923_v6, %s2897_s19  ;;  %s2048_s19 = sshll.u32 %s2901_s8, 4  ;;  %s2049_s19 = int_to_ptr.vmem [resolvable:$true] %s2048_s19 }
0x1740   :  { %s2837_s13 = scalar_lea.vmem %s2049_s19, 256  ;;  %p2842_p11 = scmp.lt.s32.totalorder %s2049_s19, %s2049_s19 }
0x1741   :  { %p2838_p10 = scmp.ne.s32.totalorder %s2049_s19, %s2837_s13  ;;  %p2843_p12 = scmp.lt.s32.totalorder %s2837_s13, %s2837_s13 }
0x1743   :  { %p2844_p13 = por %p2843_p12, %p2842_p11 }
0x1745   :  { %p2845_p0 = pnand %p2844_p13, %p2838_p10 }
0x17b1   :  { %v1926_v9 = vpop.permute.xlu0 %1925 }
0x17b2   :  { %v1928_v10 = vadd.f32 %v1926_v9, %v1910_v58 }
0x17b4   :  { %2767 = vtanh.f32 %v1928_v10 }
0x17be   :  { %v2768_v37 = vpop.eup %2767 }
0x17bf   :  { %1932 = vrot.lane.b32.xlu1 %v2768_v37, %s2899_s1 }
0x1831   :  { %v1933_v48 = vpop.permute.xlu1 %1932 }
0x1832   :  { %v1935_v19 = vmul.f32 %v1933_v48, %v1930_v42 }
0x1834   :  { %v1937_v52 = vadd.f32 %v1936_v18, %v1935_v19 }
0x1836   :  { %v1938_v7 = vsel %vm1732_vm6, %v1937_v52, %v1834_v53 }
0x1837   :  { %1941 = vrot.lane.b32.xlu0 %v1938_v7, %s2899_s1 }
0x18a9   :  { %v1942_v21 = vpop.permute.xlu0 %1941 }
0x18aa   :  { %1945 = vst.msk [vmem:[#allocation9 + $0x8] sm:$0xff] %vm242_vm4, %v1942_v21  ;;  %2501 = vmatmul.mubr.msk.f32.vlgmr.msra.gmra.mrb[18].mxu1 %vm242_vm4, %v1942_v21 }
0x18ab   :  { %2848 = shalt.err (!%p2845_p0)
}
0x18ac   :  { %s2849_s16 = scalar_lea.hbm %s3533_s11, 256 }
0x18ad   :  { %p2850_p1 = scmp.ne.s32.totalorder %s3533_s11, %s2849_s16  ;;  %p2853_p2 = scmp.lt.u32.totalorder %s2849_s16, %s3533_s11 }
0x18af   :  { %p2855_p3 = pnand %p2853_p2, %p2850_p1 }
0x18b1   :  { %2858 = shalt.err (!%p2855_p3)
}
0x18b2   :  { %2054 = dma.vmem_to_hbm [thread:$0]  %s2049_s19, 256, %s3533_s11, [#allocation10], %s2891_s29, %s2891_s29, %s2892_s30  }
0x18b3   :  { %v2107_v0 = vld [vmem:[%s3531_s9] ss:$0 sm:$0xff]  ;;  %s2902_s7 = smov [#allocation8]  }
0x18b4   :  { %s2039_s23 = sshll.u32 %s2902_s7, 4  ;;  %s2040_s23 = int_to_ptr.vmem [resolvable:$true] %s2039_s23 }
0x18b5   :  { %s2859_s2 = scalar_lea.vmem %s2040_s23, 128  ;;  %p2864_p5 = scmp.lt.s32.totalorder %s2040_s23, %s2040_s23 }
0x18b6   :  { %p2860_p4 = scmp.ne.s32.totalorder %s2040_s23, %s2859_s2  ;;  %p2865_p6 = scmp.lt.s32.totalorder %s2859_s2, %s2859_s2 }
0x18b8   :  { %p2866_p7 = por %p2865_p6, %p2864_p5 }
0x18ba   :  { %p2867_p8 = pnand %p2866_p7, %p2860_p4 }
0x197d   :  { %v2025_v54 = vpop.f32.mrb[18].mxu1 }
0x197e   :  { %v2026_v22 = vadd.f32 %v2107_v0, %v2025_v54  ;;  %v2502_v23 = vpop.f32.mrb[19].mxu1 }
0x1980   :  { %vm2029_vm4 = vcmp.ge.f32.partialorder %v2026_v22, 0.0  ;;  %v2030_v1 = vmul.f32 0.1, %v2026_v22 }
0x1982   :  { %v2031_v24 = vsel %vm2029_vm4, %v2026_v22, %v2030_v1 }
0x1983   :  { %2032 = vst.msk [vmem:[#allocation8] sm:$0xff] %vm98_vm1, %v2031_v24 }
0x1984   :  { %2870 = shalt.err (!%p2867_p8)
}
0x1985   :  { %s2871_s29 = scalar_lea.hbm %s3532_s10, 128 }
0x1986   :  { %p2872_p9 = scmp.ne.s32.totalorder %s3532_s10, %s2871_s29  ;;  %p2875_p10 = scmp.lt.u32.totalorder %s2871_s29, %s3532_s10 }
0x1988   :  { %p2877_p11 = pnand %p2875_p10, %p2872_p9 }
0x198a   :  { %2880 = shalt.err (!%p2877_p11)
}
0x198b   :  { %2042 = dma.vmem_to_hbm [thread:$0]  %s2040_s23, 128, %s3532_s10, [#allocation4]  }
0x198c   :  { %2885 = dma.done.wait [#allocation4], 128  }
0x198d   :  { %2886 = vsyncadd [#allocation4], 4294967168 }
0x198e   :  { %2887 = dma.done.wait [#allocation10], 256  }
0x198f   :  { %2888 = vsyncadd [#allocation10], 4294967040 }
0x1990   :  { %2061 = vsyncpa [#allocation3], 1 }
0x1991   :  { %2062 = vsyncpa [#allocation6], 1 }
0x1992   :  { %2063 = vsyncpa [#allocation4], 1 }
0x1993   :  { %2064 = vsyncpa [#allocation10], 1 }

</bundles_post_ra>
